<compile_context>
chip_gen: v5e
topology: v5e:2x2
jax: 0.10.0
libtpu: 0.0.40
codegen_flags: <defaults>
</compile_context>

<pallas_src>
import functools
import math

import jax
import jax.numpy as jnp
from jax.experimental import pallas as pl
from jax.experimental.pallas import tpu as pltpu


# -----------------------------------------------------------------------------
# Pallas kernel: one (group n, layer l) step of the encoder stack.
# grid = (N, L):
#   axis 0 (N = f+1 independent attention groups)  -> "parallel"  (v7x megacore)
#   axis 1 (L = nlayers)                           -> "arbitrary" (activation
#                                                     resident in h_scr)
# Per-layer weights are streamed via BlockSpec index_maps; the group's (S, E)
# activation lives in a VMEM scratch across the layer axis; on the last layer
# the group's classifier partial x_n @ Wcls^T is written (mean over groups and
# the classifier bias are applied in the wrapper — linear commutes with mean).
# -----------------------------------------------------------------------------
def encoder_layer_kernel(nhead,
                         h0_ref, kp_ref,
                         wqkv_ref, bqkv_ref, wo_ref, bo_ref,
                         ln1w_ref, ln1b_ref,
                         w1_ref, b1_ref, w2_ref, b2_ref,
                         ln2w_ref, ln2b_ref,
                         wcls_ref,
                         out_ref, h_scr):
    S, E = h_scr.shape
    hd = E // nhead
    scale = 1.0 / math.sqrt(hd)
    l = pl.program_id(1)

    @pl.when(l == 0)
    def _init():
        h_scr[...] = h0_ref[0]

    # Per-layer parameters (matmul weights bf16, pre-transposed for
    # right-multiplication; biases / LayerNorm params f32).
    wqkv = wqkv_ref[0]     # (E, 3E) bf16
    bqkv = bqkv_ref[0]     # (1, 3E) f32
    wo = wo_ref[0]         # (E, E)  bf16
    bo = bo_ref[0]         # (1, E)  f32
    ln1w = ln1w_ref[0]
    ln1b = ln1b_ref[0]
    ln2w = ln2w_ref[0]
    ln2b = ln2b_ref[0]
    w1 = w1_ref[0]         # (E, FF) bf16
    b1 = b1_ref[0]         # (1, FF) f32
    w2 = w2_ref[0]         # (FF, E) bf16
    b2 = b2_ref[0]         # (1, E)  f32
    kp = kp_ref[0]         # (1, S)  f32 additive key-padding bias of group n

    def layer_norm(x, w, b):
        # One-pass LayerNorm: mean and mean-of-squares together,
        # var = E[x^2] - mu^2 (halves the cross-lane reductions, f32 math).
        mu = jnp.mean(x, axis=-1, keepdims=True)
        ms = jnp.mean(x * x, axis=-1, keepdims=True)
        var = ms - mu * mu
        return (x - mu) * jax.lax.rsqrt(var + 1e-5) * w + b

    h = h_scr[...]                               # (S, E) f32
    h_bf = h.astype(jnp.bfloat16)

    # ---- fused QKV projection: one (S, E) @ (E, 3E) MXU matmul ----
    qkv = jnp.dot(h_bf, wqkv, preferred_element_type=jnp.float32) + bqkv

    # ---- multi-head self-attention, restricted to this group's S x S block ----
    # Head outputs are accumulated directly through the matching rows of the
    # out-projection weight (no head concatenate, shorter live ranges).
    attn = jnp.zeros((S, E), dtype=jnp.float32)
    for hh in range(nhead):
        lo = hh * hd
        q = qkv[:, lo:lo + hd].astype(jnp.bfloat16)               # (S, hd)
        k = qkv[:, E + lo:E + lo + hd].astype(jnp.bfloat16)       # (S, hd)
        v = qkv[:, 2 * E + lo:2 * E + lo + hd].astype(jnp.bfloat16)
        # Contract on the last dim of both operands — no k.T materialization.
        logits = jax.lax.dot_general(
            q, k, (((1,), (1,)), ((), ())),
            preferred_element_type=jnp.float32) * scale + kp      # (S, S)
        m = jnp.max(logits, axis=-1, keepdims=True)
        p = jnp.exp(logits - m)
        p = p * pl.reciprocal(jnp.sum(p, axis=-1, keepdims=True), approx=True)
        o = jnp.dot(p.astype(jnp.bfloat16), v,
                    preferred_element_type=jnp.float32)           # (S, hd)
        attn = attn + jnp.dot(o.astype(jnp.bfloat16), wo[lo:lo + hd, :],
                              preferred_element_type=jnp.float32)
    attn = attn + bo

    # ---- residual + LayerNorm + FFN(relu) + residual + LayerNorm (post-norm) ----
    x = layer_norm(h + attn, ln1w, ln1b)
    ffn = jnp.maximum(
        jnp.dot(x.astype(jnp.bfloat16), w1,
                preferred_element_type=jnp.float32) + b1, 0.0)
    ffn = jnp.dot(ffn.astype(jnp.bfloat16), w2,
                  preferred_element_type=jnp.float32) + b2
    x = layer_norm(x + ffn, ln2w, ln2b)

    h_scr[...] = x

    # ---- last layer: emit this group's classifier partial (bf16 MXU) ----
    @pl.when(l == pl.num_programs(1) - 1)
    def _final():
        out_ref[0] = jnp.dot(x.astype(jnp.bfloat16), wcls_ref[...],
                             preferred_element_type=jnp.float32
                             ).astype(out_ref.dtype)


# -----------------------------------------------------------------------------
# Parameter construction (deterministic, synthetic).
# -----------------------------------------------------------------------------
def init_params(key, num_classes, d_model, nhead, seq_len, nlayers, ff=2048):
    del nhead
    E = 2 * d_model
    ks = jax.random.split(key, 8)

    def nrm(k, shape, s=0.05):
        return (jax.random.normal(k, shape) * s).astype(jnp.float32)

    return dict(
        cls_token=nrm(ks[0], (1, 1, E), 0.02),
        pos_embedding=nrm(ks[1], (1, seq_len + 1, E), 0.02),
        # per-layer stacked encoder weights (PyTorch shapes: W @ x^T convention)
        wqkv=nrm(ks[2], (nlayers, 3 * E, E)),       # in_proj_weight
        bqkv=jnp.zeros((nlayers, 3 * E), jnp.float32),
        wo=nrm(ks[3], (nlayers, E, E)),             # out_proj
        bo=jnp.zeros((nlayers, E), jnp.float32),
        ln1w=jnp.ones((nlayers, E), jnp.float32),
        ln1b=jnp.zeros((nlayers, E), jnp.float32),
        w1=nrm(ks[4], (nlayers, ff, E)),            # linear1 (dim_feedforward=2048)
        b1=jnp.zeros((nlayers, ff), jnp.float32),
        w2=nrm(ks[5], (nlayers, E, ff)),            # linear2
        b2=jnp.zeros((nlayers, E), jnp.float32),
        ln2w=jnp.ones((nlayers, E), jnp.float32),
        ln2b=jnp.zeros((nlayers, E), jnp.float32),
        wcls=nrm(ks[6], (num_classes, E)),          # final self.linear
        bcls=jnp.zeros((num_classes,), jnp.float32),
    )


# -----------------------------------------------------------------------------
# Wrapper: JAX glue (reshape / concat / pos-embed / weight transposes / mask
# construction) + the Pallas kernel call + exact f32 mean over groups.
# -----------------------------------------------------------------------------
def skele_trans_layer_forward(seq, key_padding_mask, params, nhead):
    b, f, v, c = seq.shape
    E = v * c                                  # must equal 2 * d_model
    L = params["wqkv"].shape[0]
    C = params["wcls"].shape[0]

    x = seq.reshape(b, f, E).astype(jnp.float32)
    cls = jnp.broadcast_to(params["cls_token"], (b, 1, E)).astype(jnp.float32)
    h = jnp.concatenate([cls, x], axis=1)                       # (b, f+1, E)
    h = h + params["pos_embedding"][:, :f + 1, :]

    # PyTorch batch_first=False: attention sequence axis S = b, batch axis
    # N = f+1.  Group-major layout (N, S, E): group n is an independent
    # S x S attention problem through the whole encoder stack.
    S, N = b, f + 1
    h0 = jnp.transpose(h, (1, 0, 2))                            # (N, S, E)

    # Additive key-padding bias per group: (N, 1, S).  Masked keys underflow
    # to probability exactly 0.0 in f32.  (The old dense (NS, NS) block-
    # diagonal bias is no longer needed.)
    kp_bias = jnp.where(key_padding_mask, -1e9, 0.0).astype(jnp.float32)[:, None, :]

    # Pre-transpose matmul weights for right-multiplication and cast to bf16
    # (MXU fast path, halves weight DMA); biases / LN params stay f32.
    wqkv_t = jnp.transpose(params["wqkv"], (0, 2, 1)).astype(jnp.bfloat16)
    wo_t = jnp.transpose(params["wo"], (0, 2, 1)).astype(jnp.bfloat16)
    w1_t = jnp.transpose(params["w1"], (0, 2, 1)).astype(jnp.bfloat16)
    w2_t = jnp.transpose(params["w2"], (0, 2, 1)).astype(jnp.bfloat16)
    wcls_t = params["wcls"].T.astype(jnp.bfloat16)              # (E, C)

    bqkv = params["bqkv"][:, None, :]
    bo = params["bo"][:, None, :]
    b1 = params["b1"][:, None, :]
    b2 = params["b2"][:, None, :]
    ln1w = params["ln1w"][:, None, :]
    ln1b = params["ln1b"][:, None, :]
    ln2w = params["ln2w"][:, None, :]
    ln2b = params["ln2b"][:, None, :]

    def per_layer(a):   # stream one layer's slab per layer step
        return pl.BlockSpec((1,) + a.shape[1:], lambda n, l: (l, 0, 0))

    def per_group(a):   # one group's slab per group step
        return pl.BlockSpec((1,) + a.shape[1:], lambda n, l: (n, 0, 0))

    kernel = functools.partial(encoder_layer_kernel, nhead)

    # VMEM footprint here is tiny (per-group (S,E) scratch + one layer's
    # weights double-buffered); 32 MiB is a safe scoped limit on v5e/v6e/v7x.
    out_partial = pl.pallas_call(
        kernel,
        out_shape=jax.ShapeDtypeStruct((N, S, C), jnp.float32),
        grid_spec=pltpu.PrefetchScalarGridSpec(
            num_scalar_prefetch=0,
            grid=(N, L),
            in_specs=[
                per_group(h0),              # (1, S, E) initial activation
                per_group(kp_bias),         # (1, 1, S) key-padding bias
                per_layer(wqkv_t), per_layer(bqkv),
                per_layer(wo_t), per_layer(bo),
                per_layer(ln1w), per_layer(ln1b),
                per_layer(w1_t), per_layer(b1),
                per_layer(w2_t), per_layer(b2),
                per_layer(ln2w), per_layer(ln2b),
                pl.BlockSpec((E, C), lambda n, l: (0, 0)),   # classifier (bf16)
            ],
            out_specs=pl.BlockSpec((1, S, C), lambda n, l: (n, 0, 0)),
            scratch_shapes=[pltpu.VMEM((S, E), jnp.float32)],
        ),
        compiler_params=pltpu.CompilerParams(
            dimension_semantics=("parallel", "arbitrary"),
            vmem_limit_bytes=32 * 1024 * 1024),
    )(h0, kp_bias, wqkv_t, bqkv, wo_t, bo, ln1w, ln1b,
      w1_t, b1, w2_t, b2, ln2w, ln2b, wcls_t)

    # mean(dim=1) pooling commutes with the final Linear: exact f32 mean over
    # the N per-group classifier partials, then add the classifier bias.
    return jnp.mean(out_partial, axis=0) + params["bcls"][None, :]   # (b, C)


if __name__ == "__main__":
    # Module hyper-parameters (small, consistent with the forward pass).
    num_classes, d_model, nhead, seq_len, nlayers = 10, 16, 4, 8, 2
    # seq (b, f, v, c) with v*c == 2*d_model so the view matches the model dim.
    b, f, v, c = 2, seq_len, 8, 4

    key = jax.random.PRNGKey(0)
    k_params, k_seq = jax.random.split(key)

    params = init_params(k_params, num_classes, d_model, nhead, seq_len, nlayers)
    seq = jax.random.normal(k_seq, (b, f, v, c), dtype=jnp.float32)
    # src_key_padding_mask, PyTorch shape (N, S) = (f+1, b); all-False = no padding.
    mask = jnp.zeros((f + 1, b), dtype=bool)

    out = skele_trans_layer_forward(seq, mask, params, nhead)
    out = jax.block_until_ready(out)
    assert out.shape == (b, num_classes)
    assert bool(jnp.all(jnp.isfinite(out)))
    print("KERNEL_OK")
</pallas_src>

<mosaic_0001>
module attributes {stable_mosaic.version = 11 : i64} {
  func.func @encoder_layer_kernel(%arg0: i32, %arg1: i32, %arg2: memref<1x2x32xf32, #tpu.memory_space<vmem>>, %arg3: memref<1x1x2xf32, #tpu.memory_space<vmem>>, %arg4: memref<1x32x96xbf16, #tpu.memory_space<vmem>>, %arg5: memref<1x1x96xf32, #tpu.memory_space<vmem>>, %arg6: memref<1x32x32xbf16, #tpu.memory_space<vmem>>, %arg7: memref<1x1x32xf32, #tpu.memory_space<vmem>>, %arg8: memref<1x1x32xf32, #tpu.memory_space<vmem>>, %arg9: memref<1x1x32xf32, #tpu.memory_space<vmem>>, %arg10: memref<1x32x2048xbf16, #tpu.memory_space<vmem>>, %arg11: memref<1x1x2048xf32, #tpu.memory_space<vmem>>, %arg12: memref<1x2048x32xbf16, #tpu.memory_space<vmem>>, %arg13: memref<1x1x32xf32, #tpu.memory_space<vmem>>, %arg14: memref<1x1x32xf32, #tpu.memory_space<vmem>>, %arg15: memref<1x1x32xf32, #tpu.memory_space<vmem>>, %arg16: memref<32x10xbf16, #tpu.memory_space<vmem>>, %arg17: memref<1x2x10xf32, #tpu.memory_space<vmem>>, %arg18: memref<2x32xf32, #tpu.memory_space<vmem>>) attributes {dimension_semantics = [#tpu.dimension_semantics<parallel>, #tpu.dimension_semantics<arbitrary>], iteration_bounds = array<i64: 9, 2>, scalar_prefetch = 0 : i64, scratch_operands = 1 : i64, tpu.core_type = #tpu.core_type<tc>, window_params = [{transform_indices = @transform_0, window_bounds = array<i64: 1, 2, 32>}, {transform_indices = @transform_1, window_bounds = array<i64: 1, 1, 2>}, {transform_indices = @transform_2, window_bounds = array<i64: 1, 32, 96>}, {transform_indices = @transform_3, window_bounds = array<i64: 1, 1, 96>}, {transform_indices = @transform_4, window_bounds = array<i64: 1, 32, 32>}, {transform_indices = @transform_5, window_bounds = array<i64: 1, 1, 32>}, {transform_indices = @transform_6, window_bounds = array<i64: 1, 1, 32>}, {transform_indices = @transform_7, window_bounds = array<i64: 1, 1, 32>}, {transform_indices = @transform_8, window_bounds = array<i64: 1, 32, 2048>}, {transform_indices = @transform_9, window_bounds = array<i64: 1, 1, 2048>}, {transform_indices = @transform_10, window_bounds = array<i64: 1, 2048, 32>}, {transform_indices = @transform_11, window_bounds = array<i64: 1, 1, 32>}, {transform_indices = @transform_12, window_bounds = array<i64: 1, 1, 32>}, {transform_indices = @transform_13, window_bounds = array<i64: 1, 1, 32>}, {pipeline_mode = #tpu.pipeline_mode<synchronous>, transform_indices = @transform_14, window_bounds = array<i64: 32, 10>}, {transform_indices = @transform_15, window_bounds = array<i64: 1, 2, 10>}]} {
    %c0_i32 = arith.constant 0 : i32
    %0 = arith.cmpi eq, %arg1, %c0_i32 : i32
    %1 = arith.extui %0 : i1 to i32
    %c0_i32_0 = arith.constant 0 : i32
    %2 = arith.cmpi ne, %1, %c0_i32_0 : i32
    scf.if %2 {
      %c0_82 = arith.constant 0 : index
      %c0_83 = arith.constant 0 : index
      %c0_84 = arith.constant 0 : index
      %205 = vector.load %arg2[%c0_82, %c0_83, %c0_84] : memref<1x2x32xf32, #tpu.memory_space<vmem>>, vector<1x2x32xf32>
      %206 = vector.shape_cast %205 : vector<1x2x32xf32> to vector<2x32xf32>
      %c0_85 = arith.constant 0 : index
      %c0_86 = arith.constant 0 : index
      %207 = vector.load %arg18[%c0_85, %c0_86] : memref<2x32xf32, #tpu.memory_space<vmem>>, vector<2x32xf32>
      tpu.vector_store %arg18[%c0_85, %c0_86], %206 {strides = array<i32>} : memref<2x32xf32, #tpu.memory_space<vmem>>, vector<2x32xf32>,
    } else {
    }
    %c0 = arith.constant 0 : index
    %c0_1 = arith.constant 0 : index
    %c0_2 = arith.constant 0 : index
    %3 = vector.load %arg4[%c0, %c0_1, %c0_2] : memref<1x32x96xbf16, #tpu.memory_space<vmem>>, vector<1x32x96xbf16>
    %4 = vector.shape_cast %3 : vector<1x32x96xbf16> to vector<32x96xbf16>
    %c0_3 = arith.constant 0 : index
    %c0_4 = arith.constant 0 : index
    %c0_5 = arith.constant 0 : index
    %5 = vector.load %arg5[%c0_3, %c0_4, %c0_5] : memref<1x1x96xf32, #tpu.memory_space<vmem>>, vector<1x1x96xf32>
    %6 = vector.shape_cast %5 : vector<1x1x96xf32> to vector<1x96xf32>
    %c0_6 = arith.constant 0 : index
    %c0_7 = arith.constant 0 : index
    %c0_8 = arith.constant 0 : index
    %7 = vector.load %arg6[%c0_6, %c0_7, %c0_8] : memref<1x32x32xbf16, #tpu.memory_space<vmem>>, vector<1x32x32xbf16>
    %8 = vector.shape_cast %7 : vector<1x32x32xbf16> to vector<32x32xbf16>
    %c0_9 = arith.constant 0 : index
    %c0_10 = arith.constant 0 : index
    %c0_11 = arith.constant 0 : index
    %9 = vector.load %arg7[%c0_9, %c0_10, %c0_11] : memref<1x1x32xf32, #tpu.memory_space<vmem>>, vector<1x1x32xf32>
    %10 = vector.shape_cast %9 : vector<1x1x32xf32> to vector<1x32xf32>
    %c0_12 = arith.constant 0 : index
    %c0_13 = arith.constant 0 : index
    %c0_14 = arith.constant 0 : index
    %11 = vector.load %arg8[%c0_12, %c0_13, %c0_14] : memref<1x1x32xf32, #tpu.memory_space<vmem>>, vector<1x1x32xf32>
    %12 = vector.shape_cast %11 : vector<1x1x32xf32> to vector<1x32xf32>
    %c0_15 = arith.constant 0 : index
    %c0_16 = arith.constant 0 : index
    %c0_17 = arith.constant 0 : index
    %13 = vector.load %arg9[%c0_15, %c0_16, %c0_17] : memref<1x1x32xf32, #tpu.memory_space<vmem>>, vector<1x1x32xf32>
    %14 = vector.shape_cast %13 : vector<1x1x32xf32> to vector<1x32xf32>
    %c0_18 = arith.constant 0 : index
    %c0_19 = arith.constant 0 : index
    %c0_20 = arith.constant 0 : index
    %15 = vector.load %arg14[%c0_18, %c0_19, %c0_20] : memref<1x1x32xf32, #tpu.memory_space<vmem>>, vector<1x1x32xf32>
    %16 = vector.shape_cast %15 : vector<1x1x32xf32> to vector<1x32xf32>
    %c0_21 = arith.constant 0 : index
    %c0_22 = arith.constant 0 : index
    %c0_23 = arith.constant 0 : index
    %17 = vector.load %arg15[%c0_21, %c0_22, %c0_23] : memref<1x1x32xf32, #tpu.memory_space<vmem>>, vector<1x1x32xf32>
    %18 = vector.shape_cast %17 : vector<1x1x32xf32> to vector<1x32xf32>
    %c0_24 = arith.constant 0 : index
    %c0_25 = arith.constant 0 : index
    %c0_26 = arith.constant 0 : index
    %19 = vector.load %arg10[%c0_24, %c0_25, %c0_26] : memref<1x32x2048xbf16, #tpu.memory_space<vmem>>, vector<1x32x2048xbf16>
    %20 = vector.shape_cast %19 : vector<1x32x2048xbf16> to vector<32x2048xbf16>
    %c0_27 = arith.constant 0 : index
    %c0_28 = arith.constant 0 : index
    %c0_29 = arith.constant 0 : index
    %21 = vector.load %arg11[%c0_27, %c0_28, %c0_29] : memref<1x1x2048xf32, #tpu.memory_space<vmem>>, vector<1x1x2048xf32>
    %22 = vector.shape_cast %21 : vector<1x1x2048xf32> to vector<1x2048xf32>
    %c0_30 = arith.constant 0 : index
    %c0_31 = arith.constant 0 : index
    %c0_32 = arith.constant 0 : index
    %23 = vector.load %arg12[%c0_30, %c0_31, %c0_32] : memref<1x2048x32xbf16, #tpu.memory_space<vmem>>, vector<1x2048x32xbf16>
    %24 = vector.shape_cast %23 : vector<1x2048x32xbf16> to vector<2048x32xbf16>
    %c0_33 = arith.constant 0 : index
    %c0_34 = arith.constant 0 : index
    %c0_35 = arith.constant 0 : index
    %25 = vector.load %arg13[%c0_33, %c0_34, %c0_35] : memref<1x1x32xf32, #tpu.memory_space<vmem>>, vector<1x1x32xf32>
    %26 = vector.shape_cast %25 : vector<1x1x32xf32> to vector<1x32xf32>
    %c0_36 = arith.constant 0 : index
    %c0_37 = arith.constant 0 : index
    %c0_38 = arith.constant 0 : index
    %27 = vector.load %arg3[%c0_36, %c0_37, %c0_38] : memref<1x1x2xf32, #tpu.memory_space<vmem>>, vector<1x1x2xf32>
    %28 = vector.shape_cast %27 : vector<1x1x2xf32> to vector<1x2xf32>
    %c0_39 = arith.constant 0 : index
    %c0_40 = arith.constant 0 : index
    %29 = vector.load %arg18[%c0_39, %c0_40] : memref<2x32xf32, #tpu.memory_space<vmem>>, vector<2x32xf32>
    %30 = arith.truncf %29 : vector<2x32xf32> to vector<2x32xbf16>
    %cst = arith.constant dense<0.000000e+00> : vector<2x96xf32>
    %31 = tpu.matmul %30, %4, %cst {dimension_numbers = #tpu.dot_dimension_numbers<[1], [0], [0], [1], [0, 0, 1, 1], [], []>} : vector<2x32xbf16>, vector<32x96xbf16>, vector<2x96xf32> -> vector<2x96xf32>
    %32 = vector.broadcast %6 : vector<1x96xf32> to vector<2x96xf32>
    %33 = arith.addf %31, %32 : vector<2x96xf32>
    %cst_41 = arith.constant 0.000000e+00 : f32
    %34 = vector.broadcast %cst_41 : f32 to vector<2x32xf32>
    %35 = vector.extract_strided_slice %33 {offsets = [0, 0], sizes = [2, 8], strides = [1, 1]} : vector<2x96xf32> to vector<2x8xf32>
    %36 = arith.truncf %35 : vector<2x8xf32> to vector<2x8xbf16>
    %37 = vector.extract_strided_slice %33 {offsets = [0, 32], sizes = [2, 8], strides = [1, 1]} : vector<2x96xf32> to vector<2x8xf32>
    %38 = arith.truncf %37 : vector<2x8xf32> to vector<2x8xbf16>
    %39 = vector.extract_strided_slice %33 {offsets = [0, 64], sizes = [2, 8], strides = [1, 1]} : vector<2x96xf32> to vector<2x8xf32>
    %40 = arith.truncf %39 : vector<2x8xf32> to vector<2x8xbf16>
    %cst_42 = arith.constant dense<0.000000e+00> : vector<2x2xf32>
    %41 = tpu.matmul %36, %38, %cst_42 {dimension_numbers = #tpu.dot_dimension_numbers<[1], [1], [0], [0], [0, 0, 1, 0], [], []>} : vector<2x8xbf16>, vector<2x8xbf16>, vector<2x2xf32> -> vector<2x2xf32>
    %cst_43 = arith.constant 0.353553385 : f32
    %42 = vector.broadcast %cst_43 : f32 to vector<2x2xf32>
    %43 = arith.mulf %41, %42 : vector<2x2xf32>
    %44 = vector.broadcast %28 : vector<1x2xf32> to vector<2x2xf32>
    %45 = arith.addf %43, %44 : vector<2x2xf32>
    %cst_44 = arith.constant dense<0xFF800000> : vector<2xf32>
    %46 = vector.multi_reduction <maximumf>, %45, %cst_44 [1] : vector<2x2xf32> to vector<2xf32>
    %47 = vector.shape_cast %46 : vector<2xf32> to vector<2x1xf32>
    %48 = vector.broadcast %47 : vector<2x1xf32> to vector<2x2xf32>
    %49 = arith.subf %45, %48 : vector<2x2xf32>
    %50 = math.exp %49 : vector<2x2xf32>
    %cst_45 = arith.constant dense<0.000000e+00> : vector<2xf32>
    %51 = vector.multi_reduction <add>, %50, %cst_45 [1] : vector<2x2xf32> to vector<2xf32>
    %52 = vector.shape_cast %51 : vector<2xf32> to vector<2x1xf32>
    %53 = tpu.reciprocal %52 {approx = true} : vector<2x1xf32> -> vector<2x1xf32>
    %54 = vector.broadcast %53 : vector<2x1xf32> to vector<2x2xf32>
    %55 = arith.mulf %50, %54 : vector<2x2xf32>
    %56 = arith.truncf %55 : vector<2x2xf32> to vector<2x2xbf16>
    %cst_46 = arith.constant dense<0.000000e+00> : vector<2x8xf32>
    %57 = tpu.matmul %56, %40, %cst_46 {dimension_numbers = #tpu.dot_dimension_numbers<[1], [0], [0], [1], [0, 0, 1, 1], [], []>} : vector<2x2xbf16>, vector<2x8xbf16>, vector<2x8xf32> -> vector<2x8xf32>
    %58 = arith.truncf %57 : vector<2x8xf32> to vector<2x8xbf16>
    %59 = vector.extract_strided_slice %8 {offsets = [0, 0], sizes = [8, 32], strides = [1, 1]} : vector<32x32xbf16> to vector<8x32xbf16>
    %cst_47 = arith.constant dense<0.000000e+00> : vector<2x32xf32>
    %60 = tpu.matmul %58, %59, %cst_47 {dimension_numbers = #tpu.dot_dimension_numbers<[1], [0], [0], [1], [0, 0, 1, 1], [], []>} : vector<2x8xbf16>, vector<8x32xbf16>, vector<2x32xf32> -> vector<2x32xf32>
    %61 = arith.addf %34, %60 : vector<2x32xf32>
    %62 = vector.extract_strided_slice %33 {offsets = [0, 8], sizes = [2, 8], strides = [1, 1]} : vector<2x96xf32> to vector<2x8xf32>
    %63 = arith.truncf %62 : vector<2x8xf32> to vector<2x8xbf16>
    %64 = vector.extract_strided_slice %33 {offsets = [0, 40], sizes = [2, 8], strides = [1, 1]} : vector<2x96xf32> to vector<2x8xf32>
    %65 = arith.truncf %64 : vector<2x8xf32> to vector<2x8xbf16>
    %66 = vector.extract_strided_slice %33 {offsets = [0, 72], sizes = [2, 8], strides = [1, 1]} : vector<2x96xf32> to vector<2x8xf32>
    %67 = arith.truncf %66 : vector<2x8xf32> to vector<2x8xbf16>
    %cst_48 = arith.constant dense<0.000000e+00> : vector<2x2xf32>
    %68 = tpu.matmul %63, %65, %cst_48 {dimension_numbers = #tpu.dot_dimension_numbers<[1], [1], [0], [0], [0, 0, 1, 0], [], []>} : vector<2x8xbf16>, vector<2x8xbf16>, vector<2x2xf32> -> vector<2x2xf32>
    %cst_49 = arith.constant 0.353553385 : f32
    %69 = vector.broadcast %cst_49 : f32 to vector<2x2xf32>
    %70 = arith.mulf %68, %69 : vector<2x2xf32>
    %71 = vector.broadcast %28 : vector<1x2xf32> to vector<2x2xf32>
    %72 = arith.addf %70, %71 : vector<2x2xf32>
    %cst_50 = arith.constant dense<0xFF800000> : vector<2xf32>
    %73 = vector.multi_reduction <maximumf>, %72, %cst_50 [1] : vector<2x2xf32> to vector<2xf32>
    %74 = vector.shape_cast %73 : vector<2xf32> to vector<2x1xf32>
    %75 = vector.broadcast %74 : vector<2x1xf32> to vector<2x2xf32>
    %76 = arith.subf %72, %75 : vector<2x2xf32>
    %77 = math.exp %76 : vector<2x2xf32>
    %cst_51 = arith.constant dense<0.000000e+00> : vector<2xf32>
    %78 = vector.multi_reduction <add>, %77, %cst_51 [1] : vector<2x2xf32> to vector<2xf32>
    %79 = vector.shape_cast %78 : vector<2xf32> to vector<2x1xf32>
    %80 = tpu.reciprocal %79 {approx = true} : vector<2x1xf32> -> vector<2x1xf32>
    %81 = vector.broadcast %80 : vector<2x1xf32> to vector<2x2xf32>
    %82 = arith.mulf %77, %81 : vector<2x2xf32>
    %83 = arith.truncf %82 : vector<2x2xf32> to vector<2x2xbf16>
    %cst_52 = arith.constant dense<0.000000e+00> : vector<2x8xf32>
    %84 = tpu.matmul %83, %67, %cst_52 {dimension_numbers = #tpu.dot_dimension_numbers<[1], [0], [0], [1], [0, 0, 1, 1], [], []>} : vector<2x2xbf16>, vector<2x8xbf16>, vector<2x8xf32> -> vector<2x8xf32>
    %85 = arith.truncf %84 : vector<2x8xf32> to vector<2x8xbf16>
    %86 = vector.extract_strided_slice %8 {offsets = [8, 0], sizes = [8, 32], strides = [1, 1]} : vector<32x32xbf16> to vector<8x32xbf16>
    %cst_53 = arith.constant dense<0.000000e+00> : vector<2x32xf32>
    %87 = tpu.matmul %85, %86, %cst_53 {dimension_numbers = #tpu.dot_dimension_numbers<[1], [0], [0], [1], [0, 0, 1, 1], [], []>} : vector<2x8xbf16>, vector<8x32xbf16>, vector<2x32xf32> -> vector<2x32xf32>
    %88 = arith.addf %61, %87 : vector<2x32xf32>
    %89 = vector.extract_strided_slice %33 {offsets = [0, 16], sizes = [2, 8], strides = [1, 1]} : vector<2x96xf32> to vector<2x8xf32>
    %90 = arith.truncf %89 : vector<2x8xf32> to vector<2x8xbf16>
    %91 = vector.extract_strided_slice %33 {offsets = [0, 48], sizes = [2, 8], strides = [1, 1]} : vector<2x96xf32> to vector<2x8xf32>
    %92 = arith.truncf %91 : vector<2x8xf32> to vector<2x8xbf16>
    %93 = vector.extract_strided_slice %33 {offsets = [0, 80], sizes = [2, 8], strides = [1, 1]} : vector<2x96xf32> to vector<2x8xf32>
    %94 = arith.truncf %93 : vector<2x8xf32> to vector<2x8xbf16>
    %cst_54 = arith.constant dense<0.000000e+00> : vector<2x2xf32>
    %95 = tpu.matmul %90, %92, %cst_54 {dimension_numbers = #tpu.dot_dimension_numbers<[1], [1], [0], [0], [0, 0, 1, 0], [], []>} : vector<2x8xbf16>, vector<2x8xbf16>, vector<2x2xf32> -> vector<2x2xf32>
    %cst_55 = arith.constant 0.353553385 : f32
    %96 = vector.broadcast %cst_55 : f32 to vector<2x2xf32>
    %97 = arith.mulf %95, %96 : vector<2x2xf32>
    %98 = vector.broadcast %28 : vector<1x2xf32> to vector<2x2xf32>
    %99 = arith.addf %97, %98 : vector<2x2xf32>
    %cst_56 = arith.constant dense<0xFF800000> : vector<2xf32>
    %100 = vector.multi_reduction <maximumf>, %99, %cst_56 [1] : vector<2x2xf32> to vector<2xf32>
    %101 = vector.shape_cast %100 : vector<2xf32> to vector<2x1xf32>
    %102 = vector.broadcast %101 : vector<2x1xf32> to vector<2x2xf32>
    %103 = arith.subf %99, %102 : vector<2x2xf32>
    %104 = math.exp %103 : vector<2x2xf32>
    %cst_57 = arith.constant dense<0.000000e+00> : vector<2xf32>
    %105 = vector.multi_reduction <add>, %104, %cst_57 [1] : vector<2x2xf32> to vector<2xf32>
    %106 = vector.shape_cast %105 : vector<2xf32> to vector<2x1xf32>
    %107 = tpu.reciprocal %106 {approx = true} : vector<2x1xf32> -> vector<2x1xf32>
    %108 = vector.broadcast %107 : vector<2x1xf32> to vector<2x2xf32>
    %109 = arith.mulf %104, %108 : vector<2x2xf32>
    %110 = arith.truncf %109 : vector<2x2xf32> to vector<2x2xbf16>
    %cst_58 = arith.constant dense<0.000000e+00> : vector<2x8xf32>
    %111 = tpu.matmul %110, %94, %cst_58 {dimension_numbers = #tpu.dot_dimension_numbers<[1], [0], [0], [1], [0, 0, 1, 1], [], []>} : vector<2x2xbf16>, vector<2x8xbf16>, vector<2x8xf32> -> vector<2x8xf32>
    %112 = arith.truncf %111 : vector<2x8xf32> to vector<2x8xbf16>
    %113 = vector.extract_strided_slice %8 {offsets = [16, 0], sizes = [8, 32], strides = [1, 1]} : vector<32x32xbf16> to vector<8x32xbf16>
    %cst_59 = arith.constant dense<0.000000e+00> : vector<2x32xf32>
    %114 = tpu.matmul %112, %113, %cst_59 {dimension_numbers = #tpu.dot_dimension_numbers<[1], [0], [0], [1], [0, 0, 1, 1], [], []>} : vector<2x8xbf16>, vector<8x32xbf16>, vector<2x32xf32> -> vector<2x32xf32>
    %115 = arith.addf %88, %114 : vector<2x32xf32>
    %116 = vector.extract_strided_slice %33 {offsets = [0, 24], sizes = [2, 8], strides = [1, 1]} : vector<2x96xf32> to vector<2x8xf32>
    %117 = arith.truncf %116 : vector<2x8xf32> to vector<2x8xbf16>
    %118 = vector.extract_strided_slice %33 {offsets = [0, 56], sizes = [2, 8], strides = [1, 1]} : vector<2x96xf32> to vector<2x8xf32>
    %119 = arith.truncf %118 : vector<2x8xf32> to vector<2x8xbf16>
    %120 = vector.extract_strided_slice %33 {offsets = [0, 88], sizes = [2, 8], strides = [1, 1]} : vector<2x96xf32> to vector<2x8xf32>
    %121 = arith.truncf %120 : vector<2x8xf32> to vector<2x8xbf16>
    %cst_60 = arith.constant dense<0.000000e+00> : vector<2x2xf32>
    %122 = tpu.matmul %117, %119, %cst_60 {dimension_numbers = #tpu.dot_dimension_numbers<[1], [1], [0], [0], [0, 0, 1, 0], [], []>} : vector<2x8xbf16>, vector<2x8xbf16>, vector<2x2xf32> -> vector<2x2xf32>
    %cst_61 = arith.constant 0.353553385 : f32
    %123 = vector.broadcast %cst_61 : f32 to vector<2x2xf32>
    %124 = arith.mulf %122, %123 : vector<2x2xf32>
    %125 = vector.broadcast %28 : vector<1x2xf32> to vector<2x2xf32>
    %126 = arith.addf %124, %125 : vector<2x2xf32>
    %cst_62 = arith.constant dense<0xFF800000> : vector<2xf32>
    %127 = vector.multi_reduction <maximumf>, %126, %cst_62 [1] : vector<2x2xf32> to vector<2xf32>
    %128 = vector.shape_cast %127 : vector<2xf32> to vector<2x1xf32>
    %129 = vector.broadcast %128 : vector<2x1xf32> to vector<2x2xf32>
    %130 = arith.subf %126, %129 : vector<2x2xf32>
    %131 = math.exp %130 : vector<2x2xf32>
    %cst_63 = arith.constant dense<0.000000e+00> : vector<2xf32>
    %132 = vector.multi_reduction <add>, %131, %cst_63 [1] : vector<2x2xf32> to vector<2xf32>
    %133 = vector.shape_cast %132 : vector<2xf32> to vector<2x1xf32>
    %134 = tpu.reciprocal %133 {approx = true} : vector<2x1xf32> -> vector<2x1xf32>
    %135 = vector.broadcast %134 : vector<2x1xf32> to vector<2x2xf32>
    %136 = arith.mulf %131, %135 : vector<2x2xf32>
    %137 = arith.truncf %136 : vector<2x2xf32> to vector<2x2xbf16>
    %cst_64 = arith.constant dense<0.000000e+00> : vector<2x8xf32>
    %138 = tpu.matmul %137, %121, %cst_64 {dimension_numbers = #tpu.dot_dimension_numbers<[1], [0], [0], [1], [0, 0, 1, 1], [], []>} : vector<2x2xbf16>, vector<2x8xbf16>, vector<2x8xf32> -> vector<2x8xf32>
    %139 = arith.truncf %138 : vector<2x8xf32> to vector<2x8xbf16>
    %140 = vector.extract_strided_slice %8 {offsets = [24, 0], sizes = [8, 32], strides = [1, 1]} : vector<32x32xbf16> to vector<8x32xbf16>
    %cst_65 = arith.constant dense<0.000000e+00> : vector<2x32xf32>
    %141 = tpu.matmul %139, %140, %cst_65 {dimension_numbers = #tpu.dot_dimension_numbers<[1], [0], [0], [1], [0, 0, 1, 1], [], []>} : vector<2x8xbf16>, vector<8x32xbf16>, vector<2x32xf32> -> vector<2x32xf32>
    %142 = arith.addf %115, %141 : vector<2x32xf32>
    %143 = vector.broadcast %10 : vector<1x32xf32> to vector<2x32xf32>
    %144 = arith.addf %142, %143 : vector<2x32xf32>
    %145 = arith.addf %29, %144 : vector<2x32xf32>
    %cst_66 = arith.constant dense<0.000000e+00> : vector<2xf32>
    %146 = vector.multi_reduction <add>, %145, %cst_66 [1] : vector<2x32xf32> to vector<2xf32>
    %147 = vector.shape_cast %146 : vector<2xf32> to vector<2x1xf32>
    %cst_67 = arith.constant 3.200000e+01 : f32
    %148 = vector.broadcast %cst_67 : f32 to vector<2x1xf32>
    %149 = arith.divf %147, %148 : vector<2x1xf32>
    %150 = arith.mulf %145, %145 : vector<2x32xf32>
    %cst_68 = arith.constant dense<0.000000e+00> : vector<2xf32>
    %151 = vector.multi_reduction <add>, %150, %cst_68 [1] : vector<2x32xf32> to vector<2xf32>
    %152 = vector.shape_cast %151 : vector<2xf32> to vector<2x1xf32>
    %cst_69 = arith.constant 3.200000e+01 : f32
    %153 = vector.broadcast %cst_69 : f32 to vector<2x1xf32>
    %154 = arith.divf %152, %153 : vector<2x1xf32>
    %155 = arith.mulf %149, %149 : vector<2x1xf32>
    %156 = arith.subf %154, %155 : vector<2x1xf32>
    %157 = vector.broadcast %149 : vector<2x1xf32> to vector<2x32xf32>
    %158 = arith.subf %145, %157 : vector<2x32xf32>
    %cst_70 = arith.constant 9.99999974E-6 : f32
    %159 = vector.broadcast %cst_70 : f32 to vector<2x1xf32>
    %160 = arith.addf %156, %159 : vector<2x1xf32>
    %161 = math.rsqrt %160 : vector<2x1xf32>
    %162 = vector.broadcast %161 : vector<2x1xf32> to vector<2x32xf32>
    %163 = arith.mulf %158, %162 : vector<2x32xf32>
    %164 = vector.broadcast %12 : vector<1x32xf32> to vector<2x32xf32>
    %165 = arith.mulf %163, %164 : vector<2x32xf32>
    %166 = vector.broadcast %14 : vector<1x32xf32> to vector<2x32xf32>
    %167 = arith.addf %165, %166 : vector<2x32xf32>
    %168 = arith.truncf %167 : vector<2x32xf32> to vector<2x32xbf16>
    %cst_71 = arith.constant dense<0.000000e+00> : vector<2x2048xf32>
    %169 = tpu.matmul %168, %20, %cst_71 {dimension_numbers = #tpu.dot_dimension_numbers<[1], [0], [0], [1], [0, 0, 1, 1], [], []>} : vector<2x32xbf16>, vector<32x2048xbf16>, vector<2x2048xf32> -> vector<2x2048xf32>
    %170 = vector.broadcast %22 : vector<1x2048xf32> to vector<2x2048xf32>
    %171 = arith.addf %169, %170 : vector<2x2048xf32>
    %cst_72 = arith.constant 0.000000e+00 : f32
    %172 = vector.broadcast %cst_72 : f32 to vector<2x2048xf32>
    %173 = arith.maximumf %171, %172 : vector<2x2048xf32>
    %174 = arith.truncf %173 : vector<2x2048xf32> to vector<2x2048xbf16>
    %cst_73 = arith.constant dense<0.000000e+00> : vector<2x32xf32>
    %175 = tpu.matmul %174, %24, %cst_73 {dimension_numbers = #tpu.dot_dimension_numbers<[1], [0], [0], [1], [0, 0, 1, 1], [], []>} : vector<2x2048xbf16>, vector<2048x32xbf16>, vector<2x32xf32> -> vector<2x32xf32>
    %176 = vector.broadcast %26 : vector<1x32xf32> to vector<2x32xf32>
    %177 = arith.addf %175, %176 : vector<2x32xf32>
    %178 = arith.addf %167, %177 : vector<2x32xf32>
    %cst_74 = arith.constant dense<0.000000e+00> : vector<2xf32>
    %179 = vector.multi_reduction <add>, %178, %cst_74 [1] : vector<2x32xf32> to vector<2xf32>
    %180 = vector.shape_cast %179 : vector<2xf32> to vector<2x1xf32>
    %cst_75 = arith.constant 3.200000e+01 : f32
    %181 = vector.broadcast %cst_75 : f32 to vector<2x1xf32>
    %182 = arith.divf %180, %181 : vector<2x1xf32>
    %183 = arith.mulf %178, %178 : vector<2x32xf32>
    %cst_76 = arith.constant dense<0.000000e+00> : vector<2xf32>
    %184 = vector.multi_reduction <add>, %183, %cst_76 [1] : vector<2x32xf32> to vector<2xf32>
    %185 = vector.shape_cast %184 : vector<2xf32> to vector<2x1xf32>
    %cst_77 = arith.constant 3.200000e+01 : f32
    %186 = vector.broadcast %cst_77 : f32 to vector<2x1xf32>
    %187 = arith.divf %185, %186 : vector<2x1xf32>
    %188 = arith.mulf %182, %182 : vector<2x1xf32>
    %189 = arith.subf %187, %188 : vector<2x1xf32>
    %190 = vector.broadcast %182 : vector<2x1xf32> to vector<2x32xf32>
    %191 = arith.subf %178, %190 : vector<2x32xf32>
    %cst_78 = arith.constant 9.99999974E-6 : f32
    %192 = vector.broadcast %cst_78 : f32 to vector<2x1xf32>
    %193 = arith.addf %189, %192 : vector<2x1xf32>
    %194 = math.rsqrt %193 : vector<2x1xf32>
    %195 = vector.broadcast %194 : vector<2x1xf32> to vector<2x32xf32>
    %196 = arith.mulf %191, %195 : vector<2x32xf32>
    %197 = vector.broadcast %16 : vector<1x32xf32> to vector<2x32xf32>
    %198 = arith.mulf %196, %197 : vector<2x32xf32>
    %199 = vector.broadcast %18 : vector<1x32xf32> to vector<2x32xf32>
    %200 = arith.addf %198, %199 : vector<2x32xf32>
    %c0_79 = arith.constant 0 : index
    %c0_80 = arith.constant 0 : index
    %201 = vector.load %arg18[%c0_79, %c0_80] : memref<2x32xf32, #tpu.memory_space<vmem>>, vector<2x32xf32>
    tpu.vector_store %arg18[%c0_79, %c0_80], %200 {strides = array<i32>} : memref<2x32xf32, #tpu.memory_space<vmem>>, vector<2x32xf32>,
    %c1_i32 = arith.constant 1 : i32
    %202 = arith.cmpi eq, %arg1, %c1_i32 : i32
    %203 = arith.extui %202 : i1 to i32
    %c0_i32_81 = arith.constant 0 : i32
    %204 = arith.cmpi ne, %203, %c0_i32_81 : i32
    scf.if %204 {
      %205 = arith.truncf %200 : vector<2x32xf32> to vector<2x32xbf16>
      %c0_82 = arith.constant 0 : index
      %c0_83 = arith.constant 0 : index
      %206 = vector.load %arg16[%c0_82, %c0_83] : memref<32x10xbf16, #tpu.memory_space<vmem>>, vector<32x10xbf16>
      %cst_84 = arith.constant dense<0.000000e+00> : vector<2x10xf32>
      %207 = tpu.matmul %205, %206, %cst_84 {dimension_numbers = #tpu.dot_dimension_numbers<[1], [0], [0], [1], [0, 0, 1, 1], [], []>} : vector<2x32xbf16>, vector<32x10xbf16>, vector<2x10xf32> -> vector<2x10xf32>
      %c0_85 = arith.constant 0 : index
      %c0_86 = arith.constant 0 : index
      %c0_87 = arith.constant 0 : index
      %208 = vector.load %arg17[%c0_85, %c0_86, %c0_87] : memref<1x2x10xf32, #tpu.memory_space<vmem>>, vector<1x2x10xf32>
      %209 = vector.shape_cast %208 : vector<1x2x10xf32> to vector<2x10xf32>
      %210 = vector.shape_cast %207 : vector<2x10xf32> to vector<1x2x10xf32>
      tpu.vector_store %arg17[%c0_85, %c0_86, %c0_87], %210 {strides = array<i32>} : memref<1x2x10xf32, #tpu.memory_space<vmem>>, vector<1x2x10xf32>,
    } else {
    }
    return
  }
  func.func @transform_0(%arg0: i32, %arg1: i32) -> (i32, i32, i32) {
    %c0_i32 = arith.constant 0 : i32
    %c0_i32_0 = arith.constant 0 : i32
    %c0_i32_1 = arith.constant 0 : i32
    return %arg0, %c0_i32, %c0_i32_0 : i32, i32, i32
  }
  func.func @transform_1(%arg0: i32, %arg1: i32) -> (i32, i32, i32) {
    %c0_i32 = arith.constant 0 : i32
    %c0_i32_0 = arith.constant 0 : i32
    %c0_i32_1 = arith.constant 0 : i32
    return %arg0, %c0_i32, %c0_i32_0 : i32, i32, i32
  }
  func.func @transform_2(%arg0: i32, %arg1: i32) -> (i32, i32, i32) {
    %c0_i32 = arith.constant 0 : i32
    %c0_i32_0 = arith.constant 0 : i32
    %c0_i32_1 = arith.constant 0 : i32
    return %arg1, %c0_i32, %c0_i32_0 : i32, i32, i32
  }
  func.func @transform_3(%arg0: i32, %arg1: i32) -> (i32, i32, i32) {
    %c0_i32 = arith.constant 0 : i32
    %c0_i32_0 = arith.constant 0 : i32
    %c0_i32_1 = arith.constant 0 : i32
    return %arg1, %c0_i32, %c0_i32_0 : i32, i32, i32
  }
  func.func @transform_4(%arg0: i32, %arg1: i32) -> (i32, i32, i32) {
    %c0_i32 = arith.constant 0 : i32
    %c0_i32_0 = arith.constant 0 : i32
    %c0_i32_1 = arith.constant 0 : i32
    return %arg1, %c0_i32, %c0_i32_0 : i32, i32, i32
  }
  func.func @transform_5(%arg0: i32, %arg1: i32) -> (i32, i32, i32) {
    %c0_i32 = arith.constant 0 : i32
    %c0_i32_0 = arith.constant 0 : i32
    %c0_i32_1 = arith.constant 0 : i32
    return %arg1, %c0_i32, %c0_i32_0 : i32, i32, i32
  }
  func.func @transform_6(%arg0: i32, %arg1: i32) -> (i32, i32, i32) {
    %c0_i32 = arith.constant 0 : i32
    %c0_i32_0 = arith.constant 0 : i32
    %c0_i32_1 = arith.constant 0 : i32
    return %arg1, %c0_i32, %c0_i32_0 : i32, i32, i32
  }
  func.func @transform_7(%arg0: i32, %arg1: i32) -> (i32, i32, i32) {
    %c0_i32 = arith.constant 0 : i32
    %c0_i32_0 = arith.constant 0 : i32
    %c0_i32_1 = arith.constant 0 : i32
    return %arg1, %c0_i32, %c0_i32_0 : i32, i32, i32
  }
  func.func @transform_8(%arg0: i32, %arg1: i32) -> (i32, i32, i32) {
    %c0_i32 = arith.constant 0 : i32
    %c0_i32_0 = arith.constant 0 : i32
    %c0_i32_1 = arith.constant 0 : i32
    return %arg1, %c0_i32, %c0_i32_0 : i32, i32, i32
  }
  func.func @transform_9(%arg0: i32, %arg1: i32) -> (i32, i32, i32) {
    %c0_i32 = arith.constant 0 : i32
    %c0_i32_0 = arith.constant 0 : i32
    %c0_i32_1 = arith.constant 0 : i32
    return %arg1, %c0_i32, %c0_i32_0 : i32, i32, i32
  }
  func.func @transform_10(%arg0: i32, %arg1: i32) -> (i32, i32, i32) {
    %c0_i32 = arith.constant 0 : i32
    %c0_i32_0 = arith.constant 0 : i32
    %c0_i32_1 = arith.constant 0 : i32
    return %arg1, %c0_i32, %c0_i32_0 : i32, i32, i32
  }
  func.func @transform_11(%arg0: i32, %arg1: i32) -> (i32, i32, i32) {
    %c0_i32 = arith.constant 0 : i32
    %c0_i32_0 = arith.constant 0 : i32
    %c0_i32_1 = arith.constant 0 : i32
    return %arg1, %c0_i32, %c0_i32_0 : i32, i32, i32
  }
  func.func @transform_12(%arg0: i32, %arg1: i32) -> (i32, i32, i32) {
    %c0_i32 = arith.constant 0 : i32
    %c0_i32_0 = arith.constant 0 : i32
    %c0_i32_1 = arith.constant 0 : i32
    return %arg1, %c0_i32, %c0_i32_0 : i32, i32, i32
  }
  func.func @transform_13(%arg0: i32, %arg1: i32) -> (i32, i32, i32) {
    %c0_i32 = arith.constant 0 : i32
    %c0_i32_0 = arith.constant 0 : i32
    %c0_i32_1 = arith.constant 0 : i32
    return %arg1, %c0_i32, %c0_i32_0 : i32, i32, i32
  }
  func.func @transform_14(%arg0: i32, %arg1: i32) -> (i32, i32) {
    %c0_i32 = arith.constant 0 : i32
    %c0_i32_0 = arith.constant 0 : i32
    %c0_i32_1 = arith.constant 0 : i32
    return %c0_i32, %c0_i32_0 : i32, i32
  }
  func.func @transform_15(%arg0: i32, %arg1: i32) -> (i32, i32, i32) {
    %c0_i32 = arith.constant 0 : i32
    %c0_i32_0 = arith.constant 0 : i32
    %c0_i32_1 = arith.constant 0 : i32
    return %arg0, %c0_i32, %c0_i32_0 : i32, i32, i32
  }
}

</mosaic_0001>

<bundles_post_ra>
// kernel: tpu_custom_call.1
= control target key start
LH: loop header
LB: loop body
LE: loop exit
PB: predicated region body
PF: predicated region fallthrough
CT: control target
= control target key end

     0   :  { %s4884_s0 = inlined_call_operand.vmem [shape: f32[9,2,32], index: 0, kind: input, shape index: {}]   ;;  %s4885_s1 = inlined_call_operand.vmem [shape: f32[9,1,2], index: 1, kind: input, shape index: {}]   ;;  %s4886_s2 = inlined_call_operand.vmem [shape: bf16[2,32,96], index: 2, kind: input, shape index: {}]   ;;  %s4887_s3 = inlined_call_operand.vmem [shape: f32[2,1,96], index: 3, kind: input, shape index: {}]   ;;  %s4888_s4 = inlined_call_operand.vmem [shape: bf16[2,32,32], index: 4, kind: input, shape index: {}]   ;;  %s4889_s5 = inlined_call_operand.vmem [shape: f32[2,1,32], index: 5, kind: input, shape index: {}]   ;;  %s4890_s6 = inlined_call_operand.vmem [shape: f32[2,1,32], index: 6, kind: input, shape index: {}]   ;;  %s4891_s7 = inlined_call_operand.vmem [shape: f32[2,1,32], index: 7, kind: input, shape index: {}]   ;;  %s4892_s8 = inlined_call_operand.vmem [shape: bf16[2,32,2048], index: 8, kind: input, shape index: {}]   ;;  %s4893_s9 = inlined_call_operand.vmem [shape: f32[2,1,2048], index: 9, kind: input, shape index: {}]   ;;  %s4894_s10 = inlined_call_operand.vmem [shape: bf16[2,2048,32], index: 10, kind: input, shape index: {}]   ;;  %s4895_s11 = inlined_call_operand.vmem [shape: f32[2,1,32], index: 11, kind: input, shape index: {}]   ;;  %s4896_s12 = inlined_call_operand.vmem [shape: f32[2,1,32], index: 12, kind: input, shape index: {}]   ;;  %s4897_s13 = inlined_call_operand.vmem [shape: f32[2,1,32], index: 13, kind: input, shape index: {}]   ;;  %s4898_s14 = inlined_call_operand.vmem [shape: bf16[32,10], index: 14, kind: input, shape index: {}]   ;;  %s4899_s15 = inlined_call_operand.hbm [shape: f32[9,2,10], index: 15, kind: output, shape index: {}]  }
   0x1   :  { %4917 = sst [smem:[#allocation20_spill]] %s4884_s0 }
   0x2   :  { %4918 = sst [smem:[#allocation21_spill]] %s4885_s1 }
   0x3   :  { %4919 = sst [smem:[#allocation22_spill]] %s4886_s2 }
   0x4   :  { %4920 = sst [smem:[#allocation23_spill]] %s4887_s3 }
   0x5   :  { %4921 = sst [smem:[#allocation24_spill]] %s4888_s4 }
   0x6   :  { %4922 = sst [smem:[#allocation25_spill]] %s4893_s9 }
   0x7   :  { %4923 = sst [smem:[#allocation26_spill]] %s4896_s12 }
   0x8   :  { %4924 = sst [smem:[#allocation27_spill]] %s4897_s13 }
   0x9   :  { %4925 = sst [smem:[#allocation28_spill]] %s4898_s14 }
   0xa   :  { %4926 = sst [smem:[#allocation29_spill]] %s4899_s15 }
   0xb   :  { %20 = vsyncpa [#allocation4], 0 }
   0xc   :  { %22 = vsyncpa [#allocation4 + $0x1], 0  ;;  %s4311_s18 = smov 0   ;;  %s4313_s19 = smov 0  }
   0xd   :  { %s4315_s20 = smov 0   ;;  %s4317_s21 = smov 0  }
   0xe   :  { %s4319_s22 = smov 0   ;;  %s4321_s23 = smov 0  }
   0xf   :  { %s4323_s24 = smov 0   ;;  %s4325_s25 = smov 0  }
  0x10 LB: > { %4927 = sst [smem:[#allocation6_spill]] %s4189_s18  ;;  %s3134_s26 = sadd.s32 4294967295, %s4217_s25   ;;  %s4217_s25 = sphi %s4325_s25, %s28_s25   ;;  %s4213_s24 = sphi %s4323_s24, %s4977_s24   ;;  %s4209_s23 = sphi %s4321_s23, %s4976_s23   ;;  %s4205_s22 = sphi %s4319_s22, %s4975_s22   ;;  %s4201_s21 = sphi %s4317_s21, %s4974_s21   ;;  %s4197_s20 = sphi %s4315_s20, %s4973_s20   ;;  %s4193_s19 = sphi %s4313_s19, %s4972_s19   ;;  %s4189_s18 = sphi %s4311_s18, %s4971_s18  }
  0x11   : > { %4928 = sst [smem:[#allocation7_spill]] %s4193_s19  ;;  %s3135_s27 = sadd.s32 4294967294, %s4217_s25  }
  0x12   : > { %4929 = sst [smem:[#allocation8_spill]] %s4197_s20  ;;  %s37_s28 = sadd.s32 1, %s4209_s23 }
  0x13   : > { %4930 = sst [smem:[#allocation9_spill]] %s4201_s21  ;;  %p38_p0 = scmp.ge.s32.totalorder %s37_s28, 2 }
  0x14   : > { %4931 = sst [smem:[#allocation10_spill]] %s4205_s22  ;;  %s40_s29 = sadd.s32 1, %s4213_s24 }
  0x15   : > { %4932 = sst [smem:[#allocation11_spill]] %s4209_s23  ;;  %p442_p1 = scmp.ne.s32.totalorder %s4197_s20, %s4193_s19 }
  0x16   : > { %4933 = sst [smem:[#allocation12_spill]] %s4213_s24  ;;  %p443_p2 = scmp.eq.s32.totalorder %s3134_s26, 17 }
  0x17   : > { %4934 = sst [smem:[#allocation13_spill]] %s4217_s25  ;;  %s4979_s28 = smov (%p38_p0, %s37_s28), 0 }
  0x18   : > { %4935 = sst [smem:[#allocation14_spill]] %s4979_s28  ;;  %s4981_s29 = smov (!%p38_p0, %s40_s29), %s4213_s24 }
  0x19   : > { %p4360_p3 = por %p443_p2, %p442_p1  ;;  %p448_p4 = scmp.ne.s32.totalorder %s4193_s19, %s4189_s18 }
  0x1a   : > { %p42_p5 = scmp.ge.s32.totalorder %s4981_s29, 9  ;;  %p449_p6 = scmp.eq.s32.totalorder %s3135_s27, 17 }
  0x1b   : > { %s4936_s30 = scalar_select %p4360_p3, 1, 0 }
  0x1c   : > { %p3138_p7 = scmp.ge.s32.totalorder %s4217_s25, 1  ;;  %p564_p8 = scmp.lt.s32.totalorder %s4217_s25, 19 }
  0x1d   : > { %4937 = sst [smem:[#allocation15_spill]] %s4936_s30  ;;  %s4983_s29 = smov (%p42_p5, %s4981_s29), 0 }
  0x1e   : > { %4938 = sst [smem:[#allocation16_spill]] %s4983_s29  ;;  %p4370_p9 = por %p449_p6, %p448_p4 }
  0x1f   : > { %p565_p10 = pnand %p3138_p7, %p564_p8  ;;  %s429_s17 = ssub.s32 %s4213_s24, %s4983_s29 }
  0x20   : > { %s4939_s16 = scalar_select %p4370_p9, 1, 0 }
  0x21   : > { %s432_s26 = sadd.s32 1, %s4197_s20  ;;  %p430_p11 = scmp.eq.s32.totalorder %s429_s17, 0 }
  0x22   : > { %4940 = sst [smem:[#allocation17_spill]] %s4939_s16  ;;  %568 = sbr.rel (%p565_p10) target bundleno = 2349 (0x92d), region = 80 }
  0x23   : > { %s4378_s28 = scalar_select %p430_p11, %s4197_s20, %s432_s26  }
  0x25   : > { %4941 = sst [smem:[#allocation18_spill]] %s4378_s28 }
  0x27   : > { %s4904_s27 = sand.u32 1, %s4193_s19   ;;  %p659_p12 = scmp.lt.s32.totalorder %s4205_s22, 8 }
  0x28   : > { %s4384_s23 = sshll.u32 %s4904_s27, 1  ;;  %p666_p13 = scmp.lt.s32.totalorder %s4201_s21, 1 }
  0x29   : > { %s4388_s16 = scalar_select %p659_p12, %s4205_s22, 8 }
  0x2a   : > { %s4391_s17 = scalar_select %p666_p13, %s4201_s21, 1 }
  0x2b   : > { %s3140_s26 = sshll.u32 %s4388_s16, 1  ;;  %s4943_s0 = sld [smem:[#allocation20_spill]] }
  0x2c   : > { %s3842_s25 = sshll.u32 %s4391_s17, 4  ;;  %s4944_s2 = sld [smem:[#allocation22_spill]] }
  0x2d   : > { %s4945_s3 = sld [smem:[#allocation23_spill]]  ;;  %s3845_s27 = sshll.u32 %s4391_s17, 10 }
  0x2e   : > { %s4946_s4 = sld [smem:[#allocation24_spill]]  ;;  %s4441_s28 = scalar_lea.vmem %s4894_s10, %s3845_s27 }
  0x2f   : > { %s4947_s9 = sld [smem:[#allocation25_spill]]  ;;  %s704_s15 = scalar_lea.vmem %s4895_s11, %s4391_s17 }
  0x30   : > { %s4949_s14 = sld [smem:[#allocation26_spill]] }
  0x31   : > { %s662_s18 = scalar_lea.vmem %s4943_s0, %s3140_s26  ;;  %s4951_s13 = sld [smem:[#allocation9_spill]] }
  0x32   : > { %s670_s19 = scalar_lea.vmem %s4944_s2, %s3842_s25  ;;  %s3844_s2 = sshll.u32 %s4391_s17, 8 }
  0x33   : > { %s673_s21 = scalar_lea.vmem %s4945_s3, %s4391_s17 }
  0x34   : > { %s4412_s24 = scalar_lea.vmem %s4946_s4, %s3842_s25  ;;  %s4435_s4 = scalar_lea.vmem %s4892_s8, %s3844_s2 }
  0x35   : > { %s4430_s3 = scalar_lea.vmem %s4947_s9, %s3842_s25  ;;  %s658_s2 = scalar_lea.vmem [#allocation3], %s4384_s23 }
  0x36   : > { %4948 = sst [smem:[#allocation19_spill]] %s4430_s3  ;;  %s707_s25 = scalar_lea.vmem %s4949_s14, %s4391_s17 }
  0x37   : > { %s4950_s3 = sld [smem:[#allocation27_spill]]  ;;  %p3150_p0 = scmp.ne.s32.totalorder %s4951_s13, 0 }
  0x39   : > { %715 = sbr.rel (%p3150_p0) target bundleno = 64 (0x40), region = 84 }
  0x3d   : > { %s710_s12 = scalar_lea.vmem %s4950_s3, %s4391_s17 }
  0x3e   : > { %v716_v0 = vld [vmem:[%s662_s18] sm:$0x3]  ;;  %vm717_vm0 = vcmask 254976  }
  0x3f   : > { %718 = vst.msk [vmem:[#allocation2] sm:$0x3] %vm717_vm0, %v716_v0 }
  0x40 PF: > { %v3847_v1 = vld [vmem:[%s670_s19 + $0x8] sm:$0xff]  ;;  %v3846_v2 = vld [vmem:[%s670_s19] sm:$0xff]  ;;  %vm1042_vm1 = vcmask 261120   ;;  %s4219_s0 = smov 88   ;;  %s4220_s3 = smov 96   ;;  %vm1063_vm2 = vcmask 64512  }
  0x41   : > { %1052 = vmatpush.bf16.msra.mxu0 %v3847_v1  ;;  %v4093_v5 = vld [vmem:[%s673_s21] ss:$0 sm:$0xff]  ;;  %s4221_s9 = smov 120   ;;  %s4222_s18 = smov 80   ;;  %vm1187_vm3 = vcmask 1043456   ;;  %vm1088_vm4 = vcmask 9216  }
  0x42   : > { %s4223_s19 = smov 72   ;;  %s4224_s21 = smov 112   ;;  %v724_v15 = vld [vmem:[%s4412_s24] sm:$0xf]  ;;  %vm1107_vm5 = vcmask 1040384   ;;  %vm1103_vm6 = vcmask 15360  }
  0x43   : > { %v1208_v18 = vsel %vm1187_vm3, %v724_v15, 0  ;;  %s4952_s27 = sld [smem:[#allocation21_spill]]  ;;  %s4226_s26 = smov 40   ;;  %v725_v63 = vld [vmem:[%s4412_s24 + $0x4] sm:$0xf]  ;;  %vm1386_vm7 = vcmask 254976  }
  0x44   : > { %s4227_s1 = smov 64   ;;  %s4228_s14 = smov 104   ;;  %v1189_v0 = vsel %vm1187_vm3, %v725_v63, 0 }
  0x45   : > { %1053 = vmatpush.bf16.msra.mxu0 %v3846_v2  ;;  %s4229_s22 = smov 48   ;;  %s4956_s20 = scalar_lea.vmem %s4891_s7, %s4391_s17 }
  0x46   : > { %v4457_v3 = vld [vmem:[#allocation2] sm:$0x3] }
  0x47   : > { %v1026_v4 = vpack.c.bf16 %v4457_v3, %v4457_v3 }
  0x49   : > { %3159 = vmatmul.msk.bf16.vlgmr.msra.gmra.mxu0 %vm1042_vm1, %v1026_v4  ;;  %s4953_s29 = scalar_lea.vmem %s4952_s27, %s4388_s16  ;;  %s4225_s16 = smov 56  }
  0x4a   : > { %v4485_v22 = vld [vmem:[%s4953_s29] ss:$0 sm:$0xff]  ;;  %1198 = vmatpush.bf16.msrb.mxu0 %v1189_v0 }
  0x4b   : > { %v3238_v0 = vld [vmem:[%s4435_s4 + $0x80] sm:$0xf] }
  0xc6   : > { %v1055_v6 = vpop.f32.mrf.mxu0 }
  0xc7   : > { %v1056_v7 = vadd.f32 %v4093_v5, %v1055_v6 }
  0xc9   : > { %v4462_v8 = vpack.c.bf16 %v1056_v7, %v1056_v7 }
  0xcb   : > { %1127 = vrot.lane.b32.xlu2 %v4462_v8, %s4219_s0  ;;  %1061 = vrot.lane.b32.xlu0 %v4462_v8, %s4220_s3  ;;  %s4954_s3 = scalar_lea.vmem %s4889_s5, %s4391_s17 }
  0xce   : > { %v1057_v9 = vpop.f32.mrf.mxu0 }
  0xd3   : > { %1125 = vrot.lane.b32.xlu2 %v4462_v8, %s4221_s9 }
  0xdb   : > { %1225 = vrot.lane.b32.xlu2 %v4462_v8, %s4222_s18  ;;  %s4955_s18 = scalar_lea.vmem %s4890_s6, %s4391_s17 }
  0xe3   : > { %1304 = vrot.lane.b32.xlu2 %v4462_v8, %s4223_s19 }
  0xeb   : > { %1223 = vrot.lane.b32.xlu2 %v4462_v8, %s4224_s21 }
 0x125   : > { %v1128_v10 = vpop.permute.xlu2 %1127 }
 0x126   : > { %v1133_v11 = vsel %vm1063_vm2, %v1128_v10, 0 }
 0x127   : > { %1142 = vmatpush.bf16.xpose.msra.mxu3 %v1133_v11 }
 0x12d   : > { %v1126_v12 = vpop.permute.xlu2 %1125 }
 0x12e   : > { %3162 = vmatmul.msk.bf16.vlgmr.msra.gmra.mxu3 %vm1063_vm2, %v1126_v12 }
 0x135   : > { %v1226_v13 = vpop.permute.xlu2 %1225 }
 0x136   : > { %v1231_v14 = vsel %vm1063_vm2, %v1226_v13, 0 }
 0x137   : > { %1240 = vmatpush.bf16.xpose.msrb.mxu3 %v1231_v14 }
 0x13d   : > { %v1305_v16 = vpop.permute.xlu2 %1304  ;;  %v1062_v17 = vpop.permute.xlu0 %1061 }
 0x13e   : > { %v1068_v19 = vsel %vm1063_vm2, %v1062_v17, 0  ;;  %v1310_v21 = vsel %vm1063_vm2, %v1305_v16, 0 }
 0x13f   : > { %1077 = vmatpush.bf16.xpose.msra.mxu1 %v1068_v19 }
 0x145   : > { %v1224_v20 = vpop.permute.xlu2 %1223 }
 0x146   : > { %3160 = vmatmul.msk.bf16.vlgmr.msra.gmra.mxu1 %vm1063_vm2, %v4462_v8  ;;  %3166 = vmatmul.msk.bf16.vlgmr.msrb.gmra.mxu3 %vm1063_vm2, %v1224_v20 }
 0x147   : > { %1217 = vmatpush.bf16.msrb.mxu1 %v1208_v18 }
 0x14b   : > { %1319 = vmatpush.bf16.xpose.msra.mxu1 %v1310_v21 }
 0x1b1   : > { %v1144_v23 = vpop.f32.mrf.mxu3 }
 0x1b2   : > { %v1148_v24 = vmul.f32 0.35355338, %v1144_v23 }
 0x1b4   : > { %v1149_v25 = vadd.f32 %v4485_v22, %v1148_v24 }
 0x1b6   : > { %v1150_v26 = vsel %vm1088_vm4, %v1149_v25, -inf }
 0x1b7   : > { %1151 = vmax.xlane.f32.xlu2 %v1150_v26 }
 0x1b9   : > { %v1146_v27 = vpop.f32.mrf.mxu3 }
 0x1c3   : > { %v1079_v28 = vpop.f32.mrf.mxu1 }
 0x1c4   : > { %v1083_v29 = vmul.f32 0.35355338, %v1079_v28 }
 0x1c6   : > { %v1087_v30 = vadd.f32 %v4485_v22, %v1083_v29 }
 0x1c8   : > { %v1089_v31 = vsel %vm1088_vm4, %v1087_v30, -inf }
 0x1c9   : > { %v1242_v32 = vpop.f32.mrf.mxu3  ;;  %1090 = vmax.xlane.f32.xlu0 %v1089_v31 }
 0x1ca   : > { %v1246_v33 = vmul.f32 0.35355338, %v1242_v32  ;;  %v727_v32 = vld [vmem:[%s4412_s24 + $0xc] sm:$0xf] }
 0x1cb   : > { %v1081_v34 = vpop.f32.mrf.mxu1 }
 0x1cc   : > { %v4492_v35 = vadd.f32 %v4485_v22, %v1246_v33 }
 0x1ce   : > { %v1248_v36 = vsel %vm1088_vm4, %v4492_v35, -inf }
 0x1d1   : > { %v1244_v37 = vpop.f32.mrf.mxu3  ;;  %1249 = vmax.xlane.f32.xlu0 %v1248_v36 }
 0x1d2   : > { %v1365_v37 = vsel %vm1187_vm3, %v727_v32, 0 }
 0x22a   : > { %v1152_v38 = vpop.xlane.xlu2 %1151 }
 0x22b   : > { %v1153_v39 = vsub.f32 %v1149_v25, %v1152_v38 }
 0x22d   : > { %v1154_v40 = vmul.f32 1.442695, %v1153_v39 }
 0x22f   : > { %4101 = vpow2.f32 %v1154_v40 }
 0x235   : > { %v4102_v41 = vpop.eup %4101 }
 0x236   : > { %v1156_v42 = vsel %vm1088_vm4, %v4102_v41, 0.0 }
 0x237   : > { %1157 = vadd.xlane.f32.xlu0 %v1156_v42 }
 0x23c   : > { %v1091_v43 = vpop.xlane.xlu0 %1090 }
 0x23d   : > { %v1092_v44 = vsub.f32 %v1087_v30, %v1091_v43 }
 0x23f   : > { %v1093_v45 = vmul.f32 1.442695, %v1092_v44 }
 0x241   : > { %4103 = vpow2.f32 %v1093_v45 }
 0x244   : > { %v1250_v48 = vpop.xlane.xlu0 %1249 }
 0x245   : > { %v1251_v12 = vsub.f32 %v4492_v35, %v1250_v48 }
 0x247   : > { %v4104_v46 = vpop.eup %4103  ;;  %v1252_v13 = vmul.f32 1.442695, %v1251_v12  ;;  %v3865_v12 = vld [vmem:[%s4435_s4 + $0x8c] sm:$0xf] }
 0x248   : > { %v1095_v47 = vsel %vm1088_vm4, %v4104_v46, 0.0 }
 0x249   : > { %1096 = vadd.xlane.f32.xlu1 %v1095_v47 }
 0x24b   : > { %1162 = vrot.lane.b32.xlu0 %v4462_v8, %s4225_s16 }
 0x253   : > { %1339 = vrot.lane.b32.xlu0 %v4462_v8, %s4226_s26 }
 0x262   : > { %1101 = vrot.lane.b32.xlu1 %v4462_v8, %s4227_s1 }
 0x26a   : > { %1302 = vrot.lane.b32.xlu1 %v4462_v8, %s4228_s14  ;;  %s4960_s14 = sld [smem:[#allocation9_spill]] }
 0x270   : > { %p3828_p1 = scmp.ne.s32.totalorder %s4960_s14, 1 }
 0x271   : > { %s4961_s0 = sld [smem:[#allocation28_spill]] (!%p3828_p1) }
 0x2aa   : > { %v1158_v49 = vpop.xlane.xlu0 %1157 }
 0x2bc   : > { %v1097_v53 = vpop.xlane.xlu1 %1096 }
 0x2bd   : > { %v1163_v50 = vpop.permute.xlu0 %1162  ;;  %4105 = vrcp.f32 %v1097_v53 }
 0x2be   : > { %v1168_v58 = vsel %vm1107_vm5, %v1163_v50, 0  ;;  %4107 = vrcp.f32 %v1158_v49  ;;  %v4095_v50 = vld [vmem:[%s4954_s3] ss:$0 sm:$0xff] }
 0x2bf   : > { %4109 = vpow2.f32 %v1252_v13  ;;  %v3248_v13 = vld [vmem:[%s4435_s4 + $0xc8] sm:$0xf0] }
 0x2c3   : > { %v4106_v54 = vpop.eup %4105 }
 0x2c4   : > { %v1099_v55 = vmul.f32 %v4106_v54, %v4104_v46  ;;  %v4108_v60 = vpop.eup %4107 }
 0x2c5   : > { %v1340_v51 = vpop.permute.xlu0 %1339  ;;  %v1160_v61 = vmul.f32 %v4108_v60, %v4102_v41  ;;  %v4110_v23 = vpop.eup %4109  ;;  %v4230_v60 = vmov 32.0  }
 0x2c6   : > { %v1345_v52 = vsel %vm1107_vm5, %v1340_v51, 0  ;;  %v1100_v59 = vpack.c.bf16 %v1099_v55, %v1099_v55  ;;  %v1254_v24 = vsel %vm1088_vm4, %v4110_v23, 0.0 }
 0x2c7   : > { %1354 = vmatpush.bf16.msra.mxu3 %v1345_v52  ;;  %v1161_v62 = vpack.c.bf16 %v1160_v61, %v1160_v61 }
 0x2d4   : > { %v1102_v56 = vpop.permute.xlu1 %1101 }
 0x2d5   : > { %v1109_v57 = vsel %vm1107_vm5, %v1102_v56, 0 }
 0x2d6   : > { %1118 = vmatpush.bf16.msra.mxu2 %v1109_v57 }
 0x2d9   : > { %3161 = vmatmul.msk.bf16.vlgmr.msra.gmra.mxu2 %vm1103_vm6, %v1100_v59 }
 0x2da   : > { %1177 = vmatpush.bf16.msrb.mxu2 %v1168_v58 }
 0x2dc   : > { %v1303_v7 = vpop.permute.xlu1 %1302 }
 0x2e9   : > { %3163 = vmatmul.msk.bf16.vlgmr.msrb.gmra.mxu2 %vm1103_vm6, %v1161_v62 }
 0x35c   : > { %v1120_v1 = vpop.f32.mrf.mxu2 }
 0x35d   : > { %v1124_v2 = vpack.c.bf16 %v1120_v1, %v1120_v1  ;;  %v3872_v1 = vld [vmem:[%s4435_s4 + $0xbc] sm:$0xf0] }
 0x35f   : > { %3165 = vmatmul.msk.bf16.vlgmr.msrb.gmra.mxu1 %vm1063_vm2, %v1124_v2  ;;  %v3864_v2 = vld [vmem:[%s4435_s4 + $0x84] sm:$0xf] }
 0x364   : > { %v1122_v4 = vpop.f32.mrf.mxu2 }
 0x36c   : > { %v1179_v5 = vpop.f32.mrf.mxu2 }
 0x36d   : > { %v1183_v6 = vpack.c.bf16 %v1179_v5, %v1179_v5  ;;  %v3239_v5 = vor.u32 %v3872_v1, %v3238_v0  ;;  %v4096_v1 = vld [vmem:[%s4955_s18] ss:$0 sm:$0xff] }
 0x36f   : > { %3164 = vmatmul.msk.bf16.vlgmr.msrb.gmra.mxu0 %vm1063_vm2, %v1183_v6  ;;  %3169 = vmatmul.msk.bf16.vlgmr.msra.gmra.mxu1 %vm1063_vm2, %v1303_v7  ;;  %v3240_v6 = vld [vmem:[%s4435_s4 + $0xc0] sm:$0xf0]  ;;  %v3246_v7 = vld [vmem:[%s4435_s4 + $0x88] sm:$0xf] }
 0x374   : > { %v1181_v9 = vpop.f32.mrf.mxu2 }
 0x375   : > { %v3873_v9 = vld [vmem:[%s4435_s4 + $0xc4] sm:$0xf0] }
 0x3dc   : > { %v1219_v10 = vpop.f32.mrf.mxu1 }
 0x3e4   : > { %v1221_v11 = vpop.f32.mrf.mxu1 }
 0x3e5   : > { %v3247_v11 = vor.u32 %v3873_v9, %v3246_v7  ;;  %v3270_v7 = vld [vmem:[%s4435_s4 + $0xa0] sm:$0xf] }
 0x3e6   : > { %v3876_v9 = vld [vmem:[%s4435_s4 + $0xdc] sm:$0xf0] }
 0x3e7   : > { %1656 = vmatpush.bf16.msrb.mxu3 %v3247_v11  ;;  %v3278_v11 = vld [vmem:[%s4435_s4 + $0xa8] sm:$0xf] }
 0x3ec   : > { %v1200_v14 = vpop.f32.mrf.mxu0  ;;  %v1321_v15 = vpop.f32.mrf.mxu1 }
 0x3ed   : > { %v1220_v16 = vadd.f32 %v1219_v10, %v1200_v14  ;;  %v1325_v17 = vmul.f32 0.35355338, %v1321_v15  ;;  %v3243_v10 = vor.u32 %v3864_v2, %v3240_v6  ;;  %v3251_v14 = vor.u32 %v3865_v12, %v3248_v13  ;;  %v3174_v15 = vld [vmem:[%s4435_s4] sm:$0xf]  ;;  %v3877_v13 = vld [vmem:[%s4435_s4 + $0xe4] sm:$0xf0] }
 0x3ef   : > { %v1326_v18 = vadd.f32 %v4485_v22, %v1325_v17  ;;  %1643 = vmatpush.bf16.msrb.mxu1 %v3243_v10  ;;  %v3848_v17 = vld [vmem:[%s4435_s4 + $0x4] sm:$0xf] }
 0x3f0   : > { %v3272_v10 = vld [vmem:[%s4435_s4 + $0xe0] sm:$0xf0] }
 0x3f1   : > { %v1327_v19 = vsel %vm1088_vm4, %v1326_v18, -inf }
 0x3f2   : > { %1328 = vmax.xlane.f32.xlu1 %v1327_v19 }
 0x3f4   : > { %v1202_v20 = vpop.f32.mrf.mxu0  ;;  %v1323_v21 = vpop.f32.mrf.mxu1 }
 0x3f5   : > { %v3176_v20 = vld [vmem:[%s4435_s4 + $0x40] sm:$0xf0]  ;;  %v3182_v21 = vld [vmem:[%s4435_s4 + $0x8] sm:$0xf] }
 0x3fa   : > { %1255 = vadd.xlane.f32.xlu1 %v1254_v24  ;;  %v3179_v24 = vor.u32 %v3848_v17, %v3176_v20  ;;  %v3271_v17 = vor.u32 %v3876_v9, %v3270_v7  ;;  %v3206_v20 = vld [vmem:[%s4435_s4 + $0x20] sm:$0xf] }
 0x3fb   : > { %v3892_v7 = vld [vmem:[%s4441_s28 + $0x60] sm:$0xff] }
 0x3fc   : > { %1644 = vmatpush.bf16.msrb.mxu1 %v3179_v24  ;;  %v3900_v9 = vld [vmem:[%s4441_s28 + $0xa0] sm:$0xff] }
 0x465   : > { %v1329_v25 = vpop.xlane.xlu1 %1328 }
 0x466   : > { %v1330_v26 = vsub.f32 %v1326_v18, %v1329_v25 }
 0x468   : > { %v1331_v27 = vmul.f32 1.442695, %v1330_v26  ;;  %v3849_v26 = vld [vmem:[%s4435_s4 + $0xc] sm:$0xf] }
 0x46a   : > { %4111 = vpow2.f32 %v1331_v27  ;;  %v3184_v27 = vld [vmem:[%s4435_s4 + $0x48] sm:$0xf0] }
 0x46d   : > { %v1256_v22 = vpop.xlane.xlu1 %1255 }
 0x46e   : > { %4113 = vrcp.f32 %v1256_v22 }
 0x470   : > { %v4112_v28 = vpop.eup %4111 }
 0x471   : > { %v1333_v29 = vsel %vm1088_vm4, %v4112_v28, 0.0 }
 0x472   : > { %1334 = vadd.xlane.f32.xlu2 %v1333_v29  ;;  %v3187_v29 = vor.u32 %v3849_v26, %v3184_v27  ;;  %v3208_v26 = vld [vmem:[%s4435_s4 + $0x60] sm:$0xf0]  ;;  %v3214_v27 = vld [vmem:[%s4435_s4 + $0x28] sm:$0xf] }
 0x474   : > { %v4114_v31 = vpop.eup %4113 }
 0x475   : > { %v1258_v34 = vmul.f32 %v4114_v31, %v4110_v23  ;;  %v3857_v23 = vld [vmem:[%s4435_s4 + $0x44] sm:$0xf0] }
 0x476   : > { %v3183_v25 = vor.u32 %v3857_v23, %v3182_v21  ;;  %v3860_v21 = vld [vmem:[%s4435_s4 + $0x5c] sm:$0xf0]  ;;  %v3279_v23 = vor.u32 %v3877_v13, %v3278_v11  ;;  %v3891_v11 = vld [vmem:[%s4441_s28 + $0x58] sm:$0xff] }
 0x477   : > { %v1259_v40 = vpack.c.bf16 %v1258_v34, %v1258_v34  ;;  %v3874_v34 = vld [vmem:[%s4435_s4 + $0xcc] sm:$0xf0]  ;;  %v3899_v13 = vld [vmem:[%s4441_s28 + $0x98] sm:$0xff] }
 0x478   : > { %1657 = vmatpush.bf16.msrb.mxu3 %v3183_v25  ;;  %v3852_v25 = vld [vmem:[%s4435_s4 + $0x24] sm:$0xf] }
 0x48a   : > { %1260 = vrot.lane.b32.xlu2 %v4462_v8, %s4229_s22  ;;  %v726_v8 = vld [vmem:[%s4412_s24 + $0x8] sm:$0xf] }
 0x48b   : > { %v1286_v41 = vsel %vm1187_vm3, %v726_v8, 0 }
 0x48c   : > { %1295 = vmatpush.bf16.msra.mxu0 %v1286_v41 }
 0x490   : > { %1630 = vmatpush.bf16.msrb.mxu0 %v3239_v5 }
 0x4e5   : > { %v1335_v30 = vpop.xlane.xlu2 %1334 }
 0x4e6   : > { %4115 = vrcp.f32 %v1335_v30 }
 0x4e7   : > { %4117 = vrcp.f32 %v4230_v60 }
 0x4ec   : > { %v4116_v33 = vpop.eup %4115 }
 0x4ed   : > { %v1337_v35 = vmul.f32 %v4116_v33, %v4112_v28  ;;  %v1261_v36 = vpop.permute.xlu2 %1260  ;;  %v4118_v61 = vpop.eup %4117  ;;  %v3254_v33 = vld [vmem:[%s4435_s4 + $0x90] sm:$0xf] }
 0x4ee   : > { %v1266_v38 = vsel %vm1107_vm5, %v1261_v36, 0  ;;  %vm1395_vm8 = vweird.f32 %v4118_v61 }
 0x4ef   : > { %v1338_v39 = vpack.c.bf16 %v1337_v35, %v1337_v35  ;;  %1275 = vmatpush.bf16.msra.mxu2 %v1266_v38  ;;  %v3866_v35 = vld [vmem:[%s4435_s4 + $0x94] sm:$0xf] }
 0x4f0   : > { %v3256_v38 = vld [vmem:[%s4435_s4 + $0xd0] sm:$0xf0] }
 0x4f1   : > { %3170 = vmatmul.msk.bf16.vlgmr.msra.gmra.mxu3 %vm1103_vm6, %v1338_v39  ;;  %v3262_v39 = vld [vmem:[%s4435_s4 + $0x98] sm:$0xf]  ;;  %v3259_v8 = vor.u32 %v3866_v35, %v3256_v38  ;;  %v3878_v35 = vld [vmem:[%s4435_s4 + $0xec] sm:$0xf0] }
 0x4f2   : > { %3167 = vmatmul.msk.bf16.vlgmr.msra.gmra.mxu2 %vm1103_vm6, %v1259_v40  ;;  %v3875_v40 = vld [vmem:[%s4435_s4 + $0xd4] sm:$0xf0] }
 0x4f3   : > { %1374 = vmatpush.bf16.msrb.mxu2 %v1365_v37  ;;  %v3255_v37 = vor.u32 %v3874_v34, %v3254_v33  ;;  %v3263_v41 = vor.u32 %v3875_v40, %v3262_v39  ;;  %1695 = vmatpush.bf16.msra.mxu1 %v3259_v8  ;;  %v3286_v34 = vld [vmem:[%s4435_s4 + $0xb0] sm:$0xf]  ;;  %v3294_v38 = vld [vmem:[%s4435_s4 + $0xb8] sm:$0xf]  ;;  %v3871_v40 = vld [vmem:[%s4435_s4 + $0xbc] sm:$0xf] }
 0x4f4   : > { %v3879_v39 = vld [vmem:[%s4435_s4 + $0xf4] sm:$0xf0]  ;;  %v3296_v8 = vld [vmem:[%s4435_s4 + $0xf8] sm:$0xf0] }
 0x4f5   : > { %1708 = vmatpush.bf16.msra.mxu3 %v3263_v41  ;;  %v3287_v41 = vor.u32 %v3878_v35, %v3286_v34  ;;  %v3934_v34 = vld [vmem:[%s4441_s28 + $0x1b0] sm:$0xff] }
 0x4f6   : > { %v3942_v35 = vld [vmem:[%s4441_s28 + $0x1f0] sm:$0xff] }
 0x4f7   : > { %1669 = vmatpush.bf16.msra.mxu2 %v3251_v14  ;;  %v3869_v14 = vld [vmem:[%s4435_s4 + $0xac] sm:$0xf] }
 0x4fb   : > { %1670 = vmatpush.bf16.msra.mxu2 %v3187_v29  ;;  %v3853_v29 = vld [vmem:[%s4435_s4 + $0x2c] sm:$0xf] }
 0x574   : > { %v1356_v42 = vpop.f32.mrf.mxu3 }
 0x575   : > { %v1360_v43 = vpack.c.bf16 %v1356_v42, %v1356_v42  ;;  %v1277_v44 = vpop.f32.mrf.mxu2  ;;  %v3867_v42 = vld [vmem:[%s4435_s4 + $0x9c] sm:$0xf] }
 0x576   : > { %v1281_v45 = vpack.c.bf16 %v1277_v44, %v1277_v44  ;;  %v3190_v44 = vld [vmem:[%s4435_s4 + $0x10] sm:$0xf] }
 0x577   : > { %3171 = vmatmul.msk.bf16.vlgmr.msrb.gmra.mxu2 %vm1063_vm2, %v1360_v43  ;;  %v3264_v43 = vld [vmem:[%s4435_s4 + $0xd8] sm:$0xf0] }
 0x578   : > { %3168 = vmatmul.msk.bf16.vlgmr.msra.gmra.mxu0 %vm1063_vm2, %v1281_v45 }
 0x57c   : > { %v1358_v46 = vpop.f32.mrf.mxu3 }
 0x57d   : > { %v1279_v47 = vpop.f32.mrf.mxu2  ;;  %v3267_v46 = vor.u32 %v3867_v42, %v3264_v43  ;;  %v3222_v43 = vld [vmem:[%s4435_s4 + $0x30] sm:$0xf] }
 0x57e   : > { %v3858_v47 = vld [vmem:[%s4435_s4 + $0x4c] sm:$0xf0] }
 0x57f   : > { %1721 = vmatpush.bf16.msrb.mxu2 %v3267_v46  ;;  %v3299_v46 = vor.u32 %v3871_v40, %v3296_v8  ;;  %v3916_v40 = vld [vmem:[%s4441_s28 + $0x120] sm:$0xff] }
 0x580   : > { %v3924_v8 = vld [vmem:[%s4441_s28 + $0x160] sm:$0xff] }
 0x5f5   : > { %v1297_v48 = vpop.f32.mrf.mxu0 }
 0x5f6   : > { %v1301_v49 = vadd.f32 %v1297_v48, %v1220_v16  ;;  %v3856_v16 = vld [vmem:[%s4435_s4 + $0x3c] sm:$0xf0]  ;;  %v3850_v48 = vld [vmem:[%s4435_s4 + $0x14] sm:$0xf] }
 0x5f7   : > { %v3175_v19 = vor.u32 %v3856_v16, %v3174_v15  ;;  %v3280_v15 = vld [vmem:[%s4435_s4 + $0xe8] sm:$0xf0] }
 0x5f8   : > { %v3283_v24 = vor.u32 %v3869_v14, %v3280_v15  ;;  %v3907_v14 = vld [vmem:[%s4441_s28 + $0xd8] sm:$0xff]  ;;  %v3882_v15 = vld [vmem:[%s4441_s28 + $0x10] sm:$0xff] }
 0x5f9   : > { %1631 = vmatpush.bf16.msrb.mxu0 %v3175_v19 }
 0x5fa   : > { %v1376_v51 = vpop.f32.mrf.mxu2 }
 0x5fb   : > { %v1380_v52 = vadd.f32 %v1376_v51, %v1301_v49  ;;  %v3191_v49 = vor.u32 %v3858_v47, %v3190_v44  ;;  %v3198_v51 = vld [vmem:[%s4435_s4 + $0x18] sm:$0xf]  ;;  %v3862_v44 = vld [vmem:[%s4435_s4 + $0x6c] sm:$0xf0]  ;;  %v3854_v47 = vld [vmem:[%s4435_s4 + $0x34] sm:$0xf] }
 0x5fd   : > { %v1384_v53 = vadd.f32 %v4095_v50, %v1380_v52  ;;  %v1299_v54 = vpop.f32.mrf.mxu0  ;;  %1682 = vmatpush.bf16.msra.mxu0 %v3255_v37  ;;  %v3192_v50 = vld [vmem:[%s4435_s4 + $0x50] sm:$0xf0]  ;;  %v3859_v52 = vld [vmem:[%s4435_s4 + $0x54] sm:$0xf0] }
 0x5fe   : > { %v3199_v54 = vor.u32 %v3859_v52, %v3198_v51  ;;  %v3288_v37 = vld [vmem:[%s4435_s4 + $0xf0] sm:$0xf0]  ;;  %v3855_v51 = vld [vmem:[%s4435_s4 + $0x3c] sm:$0xf] }
 0x5ff   : > { %v4533_v55 = vadd.f32 %v1384_v53, %v4457_v3  ;;  %v1391_v3 = vmul.f32 32.0, %v4118_v61  ;;  %v3195_v53 = vor.u32 %v3850_v48, %v3192_v50  ;;  %v3224_v48 = vld [vmem:[%s4435_s4 + $0x70] sm:$0xf0]  ;;  %v3863_v50 = vld [vmem:[%s4435_s4 + $0x74] sm:$0xf0] }
 0x600   : > { %1709 = vmatpush.bf16.msra.mxu3 %v3199_v54  ;;  %v3232_v52 = vld [vmem:[%s4435_s4 + $0x78] sm:$0xf0]  ;;  %v3227_v54 = vor.u32 %v3854_v47, %v3224_v48 }
 0x601   : > { %v1387_v56 = vsel %vm1386_vm7, %v4533_v55, 0.0  ;;  %v1398_v57 = vmul.f32 %v4533_v55, %v4533_v55  ;;  %v1392_v62 = vsub.f32 1.0, %v1391_v3  ;;  %1683 = vmatpush.bf16.msra.mxu0 %v3191_v49  ;;  %1696 = vmatpush.bf16.msra.mxu1 %v3195_v53  ;;  %v3230_v49 = vld [vmem:[%s4435_s4 + $0x38] sm:$0xf]  ;;  %v3223_v53 = vor.u32 %v3862_v44, %v3222_v43 }
 0x602   : > { %v1378_v58 = vpop.f32.mrf.mxu2  ;;  %1388 = vadd.xlane.f32.xlu1 %v1387_v56  ;;  %v3851_v56 = vld [vmem:[%s4435_s4 + $0x1c] sm:$0xf] }
 0x603   : > { %v1399_v59 = vsel %vm1386_vm7, %v1398_v57, 0.0  ;;  %v1393_v63 = vmul.f32 %v4118_v61, %v1392_v62  ;;  %v3200_v57 = vld [vmem:[%s4435_s4 + $0x58] sm:$0xf0] }
 0x604   : > { %1400 = vadd.xlane.f32.xlu0 %v1399_v59  ;;  %v3203_v58 = vor.u32 %v3851_v56, %v3200_v57  ;;  %v3231_v56 = vor.u32 %v3863_v50, %v3230_v49  ;;  %v3235_v57 = vor.u32 %v3855_v51, %v3232_v52  ;;  %v3915_v43 = vld [vmem:[%s4441_s28 + $0x118] sm:$0xff]  ;;  %v3913_v49 = vld [vmem:[%s4441_s28 + $0x108] sm:$0xff]  ;;  %v3930_v51 = vld [vmem:[%s4441_s28 + $0x190] sm:$0xff] }
 0x605   : > { %v1394_v4 = vadd.f32 %v4118_v61, %v1393_v63  ;;  %v3923_v44 = vld [vmem:[%s4441_s28 + $0x158] sm:$0xff]  ;;  %v3921_v50 = vld [vmem:[%s4441_s28 + $0x148] sm:$0xff]  ;;  %v3938_v52 = vld [vmem:[%s4441_s28 + $0x1d0] sm:$0xff] }
 0x606   : > { %1722 = vmatpush.bf16.msrb.mxu2 %v3203_v58  ;;  %v3887_v58 = vld [vmem:[%s4441_s28 + $0x38] sm:$0xff] }
 0x607   : > { %v4551_v18 = vsel %vm1395_vm8, %v4118_v61, %v1394_v4  ;;  %v4097_v4 = vld [vmem:[%s4956_s20] ss:$0 sm:$0xff]  ;;  %v3931_v47 = vld [vmem:[%s4441_s28 + $0x198] sm:$0xff] }
 0x608   : > { %v3939_v48 = vld [vmem:[%s4441_s28 + $0x1d8] sm:$0xff] }
 0x675   : > { %v1389_v28 = vpop.xlane.xlu1 %1388 }
 0x676   : > { %v1397_v22 = vmul.f32 %v4551_v18, %v1389_v28  ;;  %v3861_v28 = vld [vmem:[%s4435_s4 + $0x64] sm:$0xf0] }
 0x677   : > { %v1401_v30 = vpop.xlane.xlu0 %1400 }
 0x678   : > { %v1403_v31 = vmul.f32 %v1397_v22, %v1397_v22  ;;  %v1402_v32 = vmul.f32 %v1401_v30, %v4551_v18  ;;  %v1405_v0 = vsub.f32 %v4533_v55, %v1397_v22  ;;  %v3868_v55 = vld [vmem:[%s4435_s4 + $0xa4] sm:$0xf]  ;;  %v3216_v22 = vld [vmem:[%s4435_s4 + $0x68] sm:$0xf0]  ;;  %v3207_v30 = vor.u32 %v3860_v21, %v3206_v20  ;;  %v3906_v20 = vld [vmem:[%s4441_s28 + $0xd0] sm:$0xff] }
 0x679   : > { %v3275_v19 = vor.u32 %v3868_v55, %v3272_v10  ;;  %v3219_v33 = vor.u32 %v3853_v29, %v3216_v22  ;;  %v3908_v55 = vld [vmem:[%s4441_s28 + $0xe0] sm:$0xff]  ;;  %v3883_v10 = vld [vmem:[%s4441_s28 + $0x18] sm:$0xff]  ;;  %v3881_v21 = vld [vmem:[%s4441_s28 + $0x8] sm:$0xff] }
 0x67a   : > { %v1404_v36 = vsub.f32 %v1402_v32, %v1403_v31  ;;  %v3211_v31 = vor.u32 %v3852_v25, %v3208_v26  ;;  %v3215_v32 = vor.u32 %v3861_v28, %v3214_v27  ;;  %v3880_v25 = vld [vmem:[%s4441_s28] sm:$0xff]  ;;  %v3919_v27 = vld [vmem:[%s4441_s28 + $0x138] sm:$0xff] }
 0x67b   : > { %v3888_v26 = vld [vmem:[%s4441_s28 + $0x40] sm:$0xff]  ;;  %v3927_v28 = vld [vmem:[%s4441_s28 + $0x178] sm:$0xff] }
 0x67c   : > { %v1406_v45 = vadd.f32 1e-05, %v1404_v36  ;;  %v3870_v36 = vld [vmem:[%s4435_s4 + $0xb4] sm:$0xf]  ;;  %v3896_v29 = vld [vmem:[%s4441_s28 + $0x80] sm:$0xff]  ;;  %s4957_s4 = sld [smem:[#allocation19_spill]] }
 0x67d   : > { %v3291_v42 = vor.u32 %v3870_v36, %v3288_v37  ;;  %v3904_v22 = vld [vmem:[%s4441_s28 + $0xc0] sm:$0xff]  ;;  %v3917_v36 = vld [vmem:[%s4441_s28 + $0x128] sm:$0xff] }
 0x67e   : > { %4119 = vrsqrt.f32 %v1406_v45  ;;  %vm1413_vm10 = vweird.f32 %v1406_v45  ;;  %v3925_v37 = vld [vmem:[%s4441_s28 + $0x168] sm:$0xff] }
 0x684   : > { %v4120_v59 = vpop.eup %4119 }
 0x685   : > { %v1408_v60 = vmul.f32 %v4120_v59, %v1406_v45  ;;  %vm1414_vm9 = vweird.f32 %v4120_v59  ;;  %v3295_v45 = vor.u32 %v3879_v39, %v3294_v38  ;;  %v3933_v38 = vld [vmem:[%s4441_s28 + $0x1a8] sm:$0xff] }
 0x686   : > { %vm1415_vm11 = vmor %vm1413_vm10, %vm1414_vm9  ;;  %v3941_v39 = vld [vmem:[%s4441_s28 + $0x1e8] sm:$0xff] }
 0x687   : > { %v1409_v61 = vmul.f32 %v4120_v59, %v1408_v60  ;;  %v3903_v60 = vld [vmem:[%s4441_s28 + $0xb8] sm:$0xff] }
 0x689   : > { %v1410_v3 = vmul.f32 0.5, %v1409_v61  ;;  %v3911_v61 = vld [vmem:[%s4441_s28 + $0xf8] sm:$0xff] }
 0x68b   : > { %v1411_v62 = vsub.f32 1.5, %v1410_v3  ;;  %v3886_v3 = vld [vmem:[%s4441_s28 + $0x30] sm:$0xff] }
 0x68d   : > { %v1412_v63 = vmul.f32 %v4120_v59, %v1411_v62  ;;  %v3894_v62 = vld [vmem:[%s4441_s28 + $0x70] sm:$0xff] }
 0x68f   : > { %v1416_v2 = vsel %vm1415_vm11, %v4120_v59, %v1412_v63  ;;  %v3895_v59 = vld [vmem:[%s4441_s28 + $0x78] sm:$0xff]  ;;  %v3902_v63 = vld [vmem:[%s4441_s28 + $0xb0] sm:$0xff] }
 0x690   : > { %v1417_v5 = vmul.f32 %v1416_v2, %v1405_v0  ;;  %v3910_v0 = vld [vmem:[%s4441_s28 + $0xf0] sm:$0xff]  ;;  %v3893_v2 = vld [vmem:[%s4441_s28 + $0x68] sm:$0xff] }
 0x692   : > { %v1421_v6 = vmul.f32 %v4096_v1, %v1417_v5  ;;  %v3885_v1 = vld [vmem:[%s4441_s28 + $0x28] sm:$0xff] }
 0x693   : > { %v3909_v5 = vld [vmem:[%s4441_s28 + $0xe8] sm:$0xff] }
 0x694   : > { %v4592_v12 = vadd.f32 %v4097_v4, %v1421_v6  ;;  %v3901_v4 = vld [vmem:[%s4441_s28 + $0xa8] sm:$0xff]  ;;  %v3884_v6 = vld [vmem:[%s4441_s28 + $0x20] sm:$0xff] }
 0x696   : > { %v4599_v16 = vpack.c.bf16 %v4592_v12, %v4592_v12 }
 0x698   : > { %3300 = vmatmul.msk.bf16.vlgmr.msrb.gmra.mxu0 %vm1042_vm1, %v4599_v16  ;;  %3301 = vmatmul.msk.bf16.vlgmr.msrb.gmra.mxu1 %vm1042_vm1, %v4599_v16 }
 0x699   : > { %3302 = vmatmul.msk.bf16.vlgmr.msrb.gmra.mxu3 %vm1042_vm1, %v4599_v16  ;;  %3303 = vmatmul.msk.bf16.vlgmr.msra.gmra.mxu2 %vm1042_vm1, %v4599_v16 }
 0x69a   : > { %1734 = vmatpush.bf16.msrb.mxu0 %v3271_v17  ;;  %1747 = vmatpush.bf16.msrb.mxu1 %v3275_v19  ;;  %v3890_v17 = vld [vmem:[%s4441_s28 + $0x50] sm:$0xff] }
 0x69b   : > { %1760 = vmatpush.bf16.msrb.mxu3 %v3279_v23  ;;  %1773 = vmatpush.bf16.msra.mxu2 %v3283_v24  ;;  %v3898_v19 = vld [vmem:[%s4441_s28 + $0x90] sm:$0xff]  ;;  %v3897_v23 = vld [vmem:[%s4441_s28 + $0x88] sm:$0xff] }
 0x69c   : > { %v3905_v24 = vld [vmem:[%s4441_s28 + $0xc8] sm:$0xff] }
 0x69e   : > { %1735 = vmatpush.bf16.msrb.mxu0 %v3207_v30  ;;  %1748 = vmatpush.bf16.msrb.mxu1 %v3211_v31  ;;  %v3935_v30 = vld [vmem:[%s4441_s28 + $0x1b8] sm:$0xff] }
 0x69f   : > { %1761 = vmatpush.bf16.msrb.mxu3 %v3215_v32  ;;  %1774 = vmatpush.bf16.msra.mxu2 %v3219_v33  ;;  %v3943_v31 = vld [vmem:[%s4441_s28 + $0x1f8] sm:$0xff]  ;;  %v3918_v32 = vld [vmem:[%s4441_s28 + $0x130] sm:$0xff] }
 0x6a0   : > { %v3926_v33 = vld [vmem:[%s4441_s28 + $0x170] sm:$0xff] }
 0x6a8   : > { %3304 = vmatmul.msk.bf16.vlgmr.msra.gmra.mxu0 %vm1042_vm1, %v4599_v16  ;;  %3305 = vmatmul.msk.bf16.vlgmr.msra.gmra.mxu1 %vm1042_vm1, %v4599_v16 }
 0x6a9   : > { %3306 = vmatmul.msk.bf16.vlgmr.msra.gmra.mxu3 %vm1042_vm1, %v4599_v16  ;;  %3307 = vmatmul.msk.bf16.vlgmr.msrb.gmra.mxu2 %vm1042_vm1, %v4599_v16 }
 0x6aa   : > { %1786 = vmatpush.bf16.msra.mxu0 %v3287_v41  ;;  %1799 = vmatpush.bf16.msra.mxu1 %v3291_v42  ;;  %v3932_v41 = vld [vmem:[%s4441_s28 + $0x1a0] sm:$0xff] }
 0x6ab   : > { %1812 = vmatpush.bf16.msra.mxu3 %v3295_v45  ;;  %1825 = vmatpush.bf16.msrb.mxu2 %v3299_v46  ;;  %v3940_v42 = vld [vmem:[%s4441_s28 + $0x1e0] sm:$0xff]  ;;  %v3914_v45 = vld [vmem:[%s4441_s28 + $0x110] sm:$0xff] }
 0x6ac   : > { %v3922_v46 = vld [vmem:[%s4441_s28 + $0x150] sm:$0xff] }
 0x6ae   : > { %1787 = vmatpush.bf16.msra.mxu0 %v3223_v53  ;;  %1800 = vmatpush.bf16.msra.mxu1 %v3227_v54  ;;  %v3912_v53 = vld [vmem:[%s4441_s28 + $0x100] sm:$0xff] }
 0x6af   : > { %1813 = vmatpush.bf16.msra.mxu3 %v3231_v56  ;;  %1826 = vmatpush.bf16.msrb.mxu2 %v3235_v57  ;;  %v3920_v54 = vld [vmem:[%s4441_s28 + $0x140] sm:$0xff]  ;;  %v3929_v56 = vld [vmem:[%s4441_s28 + $0x188] sm:$0xff] }
 0x6b0   : > { %v3937_v57 = vld [vmem:[%s4441_s28 + $0x1c8] sm:$0xff] }
 0x6b8   : > { %3308 = vmatmul.msk.bf16.vlgmr.msrb.gmra.mxu0 %vm1042_vm1, %v4599_v16  ;;  %3309 = vmatmul.msk.bf16.vlgmr.msrb.gmra.mxu1 %vm1042_vm1, %v4599_v16 }
 0x6b9   : > { %3310 = vmatmul.msk.bf16.vlgmr.msrb.gmra.mxu3 %vm1042_vm1, %v4599_v16  ;;  %3311 = vmatmul.msk.bf16.vlgmr.msra.gmra.mxu2 %vm1042_vm1, %v4599_v16 }
 0x6ba   : > { %2635 = vmatpush.bf16.msrb.mxu0 %v3887_v58  ;;  %2648 = vmatpush.bf16.msrb.mxu1 %v3895_v59  ;;  %v3928_v58 = vld [vmem:[%s4441_s28 + $0x180] sm:$0xff] }
 0x6bb   : > { %2661 = vmatpush.bf16.msrb.mxu3 %v3903_v60  ;;  %2674 = vmatpush.bf16.msra.mxu2 %v3911_v61  ;;  %v3936_v59 = vld [vmem:[%s4441_s28 + $0x1c0] sm:$0xff] }
 0x6bc   : > { %v4722_v60 = vld [vmem:[%s4957_s4] sm:$0xff] }
 0x6bd   : > { %v1429_v61 = vperm.slane %v4722_v60, 0 }
 0x6be   : > { %2636 = vmatpush.bf16.msrb.mxu0 %v3886_v3  ;;  %2649 = vmatpush.bf16.msrb.mxu1 %v3894_v62  ;;  %v1430_v3 = vperm.slane %v4722_v60, 1 }
 0x6bf   : > { %2662 = vmatpush.bf16.msrb.mxu3 %v3902_v63  ;;  %2675 = vmatpush.bf16.msra.mxu2 %v3910_v0 }
 0x6c2   : > { %2637 = vmatpush.bf16.msrb.mxu0 %v3885_v1  ;;  %2650 = vmatpush.bf16.msrb.mxu1 %v3893_v2 }
 0x6c3   : > { %2663 = vmatpush.bf16.msrb.mxu3 %v3901_v4  ;;  %2676 = vmatpush.bf16.msra.mxu2 %v3909_v5  ;;  %v1431_v5 = vperm.slane %v4722_v60, 2 }
 0x6c6   : > { %2638 = vmatpush.bf16.msrb.mxu0 %v3884_v6  ;;  %2651 = vmatpush.bf16.msrb.mxu1 %v3892_v7  ;;  %v1432_v6 = vperm.slane %v4722_v60, 3  ;;  %v3951_v7 = vld [vmem:[%s4441_s28 + $0x238] sm:$0xff] }
 0x6c7   : > { %2664 = vmatpush.bf16.msrb.mxu3 %v3900_v9  ;;  %2677 = vmatpush.bf16.msra.mxu2 %v3908_v55  ;;  %v3959_v9 = vld [vmem:[%s4441_s28 + $0x278] sm:$0xff] }
 0x6c8   : > { %3312 = vmatmul.msk.bf16.vlgmr.msra.gmra.mxu0 %vm1042_vm1, %v4599_v16  ;;  %3313 = vmatmul.msk.bf16.vlgmr.msra.gmra.mxu1 %vm1042_vm1, %v4599_v16 }
 0x6c9   : > { %3314 = vmatmul.msk.bf16.vlgmr.msra.gmra.mxu3 %vm1042_vm1, %v4599_v16  ;;  %3315 = vmatmul.msk.bf16.vlgmr.msrb.gmra.mxu2 %vm1042_vm1, %v4599_v16  ;;  %v3889_v16 = vld [vmem:[%s4441_s28 + $0x48] sm:$0xff] }
 0x6ca   : > { %2639 = vmatpush.bf16.msrb.mxu0 %v3883_v10  ;;  %2652 = vmatpush.bf16.msrb.mxu1 %v3891_v11 }
 0x6cb   : > { %2665 = vmatpush.bf16.msrb.mxu3 %v3899_v13  ;;  %2678 = vmatpush.bf16.msra.mxu2 %v3907_v14 }
 0x6ce   : > { %2640 = vmatpush.bf16.msrb.mxu0 %v3882_v15  ;;  %2653 = vmatpush.bf16.msrb.mxu1 %v3890_v17 }
 0x6cf   : > { %2666 = vmatpush.bf16.msrb.mxu3 %v3898_v19  ;;  %2679 = vmatpush.bf16.msra.mxu2 %v3906_v20  ;;  %v3950_v20 = vld [vmem:[%s4441_s28 + $0x230] sm:$0xff] }
 0x6d2   : > { %2641 = vmatpush.bf16.msrb.mxu0 %v3881_v21  ;;  %2654 = vmatpush.bf16.msrb.mxu1 %v3889_v16  ;;  %v3958_v21 = vld [vmem:[%s4441_s28 + $0x270] sm:$0xff] }
 0x6d3   : > { %2667 = vmatpush.bf16.msrb.mxu3 %v3897_v23  ;;  %2680 = vmatpush.bf16.msra.mxu2 %v3905_v24  ;;  %v3967_v24 = vld [vmem:[%s4441_s28 + $0x2b8] sm:$0xff] }
 0x6d6   : > { %2642 = vmatpush.bf16.msrb.mxu0 %v3880_v25  ;;  %2655 = vmatpush.bf16.msrb.mxu1 %v3888_v26  ;;  %v3975_v25 = vld [vmem:[%s4441_s28 + $0x2f8] sm:$0xff] }
 0x6d7   : > { %2668 = vmatpush.bf16.msrb.mxu3 %v3896_v29  ;;  %2681 = vmatpush.bf16.msra.mxu2 %v3904_v22  ;;  %v3957_v29 = vld [vmem:[%s4441_s28 + $0x268] sm:$0xff]  ;;  %v1433_v22 = vperm.slane %v4722_v60, 4 }
 0x6da   : > { %2687 = vmatpush.bf16.msra.mxu0 %v3919_v27  ;;  %2700 = vmatpush.bf16.msra.mxu1 %v3927_v28  ;;  %v3949_v28 = vld [vmem:[%s4441_s28 + $0x228] sm:$0xff] }
 0x6db   : > { %2713 = vmatpush.bf16.msra.mxu3 %v3935_v30  ;;  %2726 = vmatpush.bf16.msrb.mxu2 %v3943_v31  ;;  %v1434_v30 = vperm.slane %v4722_v60, 5 }
 0x6de   : > { %2688 = vmatpush.bf16.msra.mxu0 %v3918_v32  ;;  %2701 = vmatpush.bf16.msra.mxu1 %v3926_v33  ;;  %v3966_v33 = vld [vmem:[%s4441_s28 + $0x2b0] sm:$0xff] }
 0x6df   : > { %2714 = vmatpush.bf16.msra.mxu3 %v3934_v34  ;;  %2727 = vmatpush.bf16.msrb.mxu2 %v3942_v35  ;;  %v3974_v34 = vld [vmem:[%s4441_s28 + $0x2f0] sm:$0xff] }
 0x6e2   : > { %2689 = vmatpush.bf16.msra.mxu0 %v3917_v36  ;;  %2702 = vmatpush.bf16.msra.mxu1 %v3925_v37  ;;  %v3948_v37 = vld [vmem:[%s4441_s28 + $0x220] sm:$0xff] }
 0x6e3   : > { %2715 = vmatpush.bf16.msra.mxu3 %v3933_v38  ;;  %2728 = vmatpush.bf16.msrb.mxu2 %v3941_v39  ;;  %v3956_v38 = vld [vmem:[%s4441_s28 + $0x260] sm:$0xff] }
 0x6e6   : > { %2690 = vmatpush.bf16.msra.mxu0 %v3916_v40  ;;  %2703 = vmatpush.bf16.msra.mxu1 %v3924_v8 }
 0x6e7   : > { %2716 = vmatpush.bf16.msra.mxu3 %v3932_v41  ;;  %2729 = vmatpush.bf16.msrb.mxu2 %v3940_v42  ;;  %v3965_v42 = vld [vmem:[%s4441_s28 + $0x2a8] sm:$0xff] }
 0x6ea   : > { %2691 = vmatpush.bf16.msra.mxu0 %v3915_v43  ;;  %2704 = vmatpush.bf16.msra.mxu1 %v3923_v44  ;;  %v3973_v43 = vld [vmem:[%s4441_s28 + $0x2e8] sm:$0xff]  ;;  %v1435_v44 = vperm.slane %v4722_v60, 6 }
 0x6eb   : > { %2717 = vmatpush.bf16.msra.mxu3 %v3931_v47  ;;  %2730 = vmatpush.bf16.msrb.mxu2 %v3939_v48  ;;  %v3947_v48 = vld [vmem:[%s4441_s28 + $0x218] sm:$0xff] }
 0x6ee   : > { %2692 = vmatpush.bf16.msra.mxu0 %v3914_v45  ;;  %2705 = vmatpush.bf16.msra.mxu1 %v3922_v46  ;;  %v1436_v45 = vperm.slane %v4722_v60, 7  ;;  %v3954_v60 = vld [vmem:[%s4441_s28 + $0x250] sm:$0xff] }
 0x6ef   : > { %2718 = vmatpush.bf16.msra.mxu3 %v3930_v51  ;;  %2731 = vmatpush.bf16.msrb.mxu2 %v3938_v52  ;;  %v3964_v52 = vld [vmem:[%s4441_s28 + $0x2a0] sm:$0xff] }
 0x6f2   : > { %2693 = vmatpush.bf16.msra.mxu0 %v3913_v49  ;;  %2706 = vmatpush.bf16.msra.mxu1 %v3921_v50  ;;  %v3955_v49 = vld [vmem:[%s4441_s28 + $0x258] sm:$0xff] }
 0x6f3   : > { %2719 = vmatpush.bf16.msra.mxu3 %v3929_v56  ;;  %2732 = vmatpush.bf16.msrb.mxu2 %v3937_v57 }
 0x6f6   : > { %2694 = vmatpush.bf16.msra.mxu0 %v3912_v53  ;;  %2707 = vmatpush.bf16.msra.mxu1 %v3920_v54  ;;  %v3972_v53 = vld [vmem:[%s4441_s28 + $0x2e0] sm:$0xff] }
 0x6f7   : > { %2720 = vmatpush.bf16.msra.mxu3 %v3928_v58  ;;  %2733 = vmatpush.bf16.msrb.mxu2 %v3936_v59  ;;  %v3946_v59 = vld [vmem:[%s4441_s28 + $0x210] sm:$0xff] }
 0x715   : > { %v1633_v62 = vpop.f32.mrf.mxu0  ;;  %v1646_v63 = vpop.f32.mrf.mxu1 }
 0x716   : > { %v1634_v0 = vadd.f32 %v1633_v62, %v1429_v61  ;;  %v1647_v1 = vadd.f32 %v1646_v63, %v1430_v3  ;;  %v4753_v62 = vld [vmem:[%s4957_s4 + $0x8] sm:$0xff]  ;;  %v3963_v63 = vld [vmem:[%s4441_s28 + $0x298] sm:$0xff] }
 0x718   : > { %v1832_v2 = vmax.f32 %v1634_v0, 0.0  ;;  %v1833_v4 = vmax.f32 %v1647_v1, 0.0  ;;  %v3971_v0 = vld [vmem:[%s4441_s28 + $0x2d8] sm:$0xff] }
 0x71a   : > { %v1848_v55 = vpack.c.bf16 %v1832_v2, %v1832_v2  ;;  %v1849_v10 = vpack.c.bf16 %v1833_v4, %v1833_v4  ;;  %v3945_v4 = vld [vmem:[%s4441_s28 + $0x208] sm:$0xff] }
 0x71c   : > { %v1659_v11 = vpop.f32.mrf.mxu3  ;;  %v1672_v13 = vpop.f32.mrf.mxu2  ;;  %2643 = vmatmul.bf16.vlgmr.msrb.gmra.mxu0 %v1848_v55  ;;  %2656 = vmatmul.bf16.vlgmr.msrb.gmra.mxu1 %v1849_v10  ;;  %v3962_v10 = vld [vmem:[%s4441_s28 + $0x290] sm:$0xff] }
 0x71d   : > { %v1660_v14 = vadd.f32 %v1659_v11, %v1431_v5  ;;  %v1673_v15 = vadd.f32 %v1672_v13, %v1432_v6  ;;  %2739 = vmatpush.bf16.msrb.mxu0 %v3951_v7  ;;  %2752 = vmatpush.bf16.msrb.mxu1 %v3959_v9  ;;  %v1635_v17 = vpop.f32.mrf.mxu0  ;;  %v1648_v19 = vpop.f32.mrf.mxu1  ;;  %v3953_v5 = vld [vmem:[%s4441_s28 + $0x248] sm:$0xff]  ;;  %v1437_v6 = vperm.slane %v4753_v62, 0  ;;  %v1438_v7 = vperm.slane %v4753_v62, 1  ;;  %v3970_v11 = vld [vmem:[%s4441_s28 + $0x2d0] sm:$0xff] }
 0x71e   : > { %v3944_v19 = vld [vmem:[%s4441_s28 + $0x200] sm:$0xff] }
 0x71f   : > { %v1834_v16 = vmax.f32 %v1660_v14, 0.0  ;;  %v1835_v23 = vmax.f32 %v1673_v15, 0.0 }
 0x721   : > { %v1850_v26 = vpack.c.bf16 %v1834_v16, %v1834_v16  ;;  %v1851_v27 = vpack.c.bf16 %v1835_v23, %v1835_v23  ;;  %2740 = vmatpush.bf16.msrb.mxu0 %v3950_v20  ;;  %2753 = vmatpush.bf16.msrb.mxu1 %v3958_v21  ;;  %v3952_v20 = vld [vmem:[%s4441_s28 + $0x240] sm:$0xff]  ;;  %v3983_v21 = vld [vmem:[%s4441_s28 + $0x338] sm:$0xff] }
 0x722   : > { %v3991_v16 = vld [vmem:[%s4441_s28 + $0x378] sm:$0xff] }
 0x723   : > { %2669 = vmatmul.bf16.vlgmr.msrb.gmra.mxu3 %v1850_v26  ;;  %2682 = vmatmul.bf16.vlgmr.msra.gmra.mxu2 %v1851_v27  ;;  %v3969_v26 = vld [vmem:[%s4441_s28 + $0x2c8] sm:$0xff]  ;;  %v1439_v27 = vperm.slane %v4753_v62, 2 }
 0x724   : > { %2765 = vmatpush.bf16.msrb.mxu3 %v3967_v24  ;;  %2778 = vmatpush.bf16.msra.mxu2 %v3975_v25  ;;  %v1661_v31 = vpop.f32.mrf.mxu3  ;;  %v1674_v32 = vpop.f32.mrf.mxu2  ;;  %v3961_v25 = vld [vmem:[%s4441_s28 + $0x288] sm:$0xff] }
 0x725   : > { %2741 = vmatpush.bf16.msrb.mxu0 %v3949_v28  ;;  %2754 = vmatpush.bf16.msrb.mxu1 %v3957_v29  ;;  %v1685_v35 = vpop.f32.mrf.mxu0  ;;  %v1698_v36 = vpop.f32.mrf.mxu1  ;;  %v1440_v28 = vperm.slane %v4753_v62, 3  ;;  %v3990_v31 = vld [vmem:[%s4441_s28 + $0x370] sm:$0xff] }
 0x726   : > { %v1686_v39 = vadd.f32 %v1685_v35, %v1433_v22  ;;  %v1699_v40 = vadd.f32 %v1698_v36, %v1434_v30  ;;  %v3982_v30 = vld [vmem:[%s4441_s28 + $0x330] sm:$0xff]  ;;  %v3968_v35 = vld [vmem:[%s4441_s28 + $0x2c0] sm:$0xff] }
 0x728   : > { %v1836_v8 = vmax.f32 %v1686_v39, 0.0  ;;  %v1837_v41 = vmax.f32 %v1699_v40, 0.0  ;;  %2766 = vmatpush.bf16.msrb.mxu3 %v3966_v33  ;;  %2779 = vmatpush.bf16.msra.mxu2 %v3974_v34  ;;  %v3960_v34 = vld [vmem:[%s4441_s28 + $0x280] sm:$0xff]  ;;  %v3999_v40 = vld [vmem:[%s4441_s28 + $0x3b8] sm:$0xff] }
 0x729   : > { %2742 = vmatpush.bf16.msrb.mxu0 %v3948_v37  ;;  %2755 = vmatpush.bf16.msrb.mxu1 %v3956_v38 }
 0x72a   : > { %v1852_v46 = vpack.c.bf16 %v1836_v8, %v1836_v8  ;;  %v1853_v47 = vpack.c.bf16 %v1837_v41, %v1837_v41  ;;  %v4007_v8 = vld [vmem:[%s4441_s28 + $0x3f8] sm:$0xff] }
 0x72c   : > { %2767 = vmatpush.bf16.msrb.mxu3 %v3965_v42  ;;  %2780 = vmatpush.bf16.msra.mxu2 %v3973_v43  ;;  %v1711_v50 = vpop.f32.mrf.mxu3  ;;  %v1724_v51 = vpop.f32.mrf.mxu2  ;;  %v3981_v43 = vld [vmem:[%s4441_s28 + $0x328] sm:$0xff] }
 0x72d   : > { %v1712_v54 = vadd.f32 %v1711_v50, %v1435_v44  ;;  %v1725_v56 = vadd.f32 %v1724_v51, %v1436_v45  ;;  %2695 = vmatmul.bf16.vlgmr.msra.gmra.mxu0 %v1852_v46  ;;  %2708 = vmatmul.bf16.vlgmr.msra.gmra.mxu1 %v1853_v47  ;;  %v1687_v57 = vpop.f32.mrf.mxu0  ;;  %v1700_v58 = vpop.f32.mrf.mxu1  ;;  %v3989_v44 = vld [vmem:[%s4441_s28 + $0x368] sm:$0xff]  ;;  %v3998_v47 = vld [vmem:[%s4441_s28 + $0x3b0] sm:$0xff]  ;;  %v3988_v50 = vld [vmem:[%s4441_s28 + $0x360] sm:$0xff] }
 0x72e   : > { %2743 = vmatpush.bf16.msrb.mxu0 %v3947_v48  ;;  %2756 = vmatpush.bf16.msrb.mxu1 %v3955_v49  ;;  %v4006_v48 = vld [vmem:[%s4441_s28 + $0x3f0] sm:$0xff]  ;;  %v3980_v49 = vld [vmem:[%s4441_s28 + $0x320] sm:$0xff]  ;;  %v4005_v57 = vld [vmem:[%s4441_s28 + $0x3e8] sm:$0xff] }
 0x72f   : > { %v1838_v61 = vmax.f32 %v1712_v54, 0.0  ;;  %v1839_v3 = vmax.f32 %v1725_v56, 0.0  ;;  %v3997_v56 = vld [vmem:[%s4441_s28 + $0x3a8] sm:$0xff]  ;;  %v3979_v58 = vld [vmem:[%s4441_s28 + $0x318] sm:$0xff] }
 0x730   : > { %2768 = vmatpush.bf16.msrb.mxu3 %v3964_v52  ;;  %2781 = vmatpush.bf16.msra.mxu2 %v3972_v53 }
 0x731   : > { %v1854_v1 = vpack.c.bf16 %v1838_v61, %v1838_v61  ;;  %v1855_v2 = vpack.c.bf16 %v1839_v3, %v1839_v3  ;;  %v4004_v61 = vld [vmem:[%s4441_s28 + $0x3e0] sm:$0xff]  ;;  %v3978_v3 = vld [vmem:[%s4441_s28 + $0x310] sm:$0xff] }
 0x732   : > { %2744 = vmatpush.bf16.msrb.mxu0 %v3946_v59  ;;  %2757 = vmatpush.bf16.msrb.mxu1 %v3954_v60  ;;  %v3987_v59 = vld [vmem:[%s4441_s28 + $0x358] sm:$0xff]  ;;  %v3996_v60 = vld [vmem:[%s4441_s28 + $0x3a0] sm:$0xff] }
 0x733   : > { %2721 = vmatmul.bf16.vlgmr.msra.gmra.mxu3 %v1854_v1  ;;  %2734 = vmatmul.bf16.vlgmr.msrb.gmra.mxu2 %v1855_v2  ;;  %v1442_v1 = vperm.slane %v4753_v62, 5 }
 0x734   : > { %2769 = vmatpush.bf16.msrb.mxu3 %v3963_v63  ;;  %2782 = vmatpush.bf16.msra.mxu2 %v3971_v0  ;;  %v1713_v9 = vpop.f32.mrf.mxu3  ;;  %v1726_v55 = vpop.f32.mrf.mxu2  ;;  %v3986_v63 = vld [vmem:[%s4441_s28 + $0x350] sm:$0xff]  ;;  %v1441_v0 = vperm.slane %v4753_v62, 4 }
 0x735   : > { %v1737_v13 = vpop.f32.mrf.mxu0  ;;  %v1750_v14 = vpop.f32.mrf.mxu1  ;;  %v4003_v9 = vld [vmem:[%s4441_s28 + $0x3d8] sm:$0xff]  ;;  %v3977_v55 = vld [vmem:[%s4441_s28 + $0x308] sm:$0xff] }
 0x736   : > { %2745 = vmatpush.bf16.msrb.mxu0 %v3945_v4  ;;  %2758 = vmatpush.bf16.msrb.mxu1 %v3953_v5  ;;  %v1738_v15 = vadd.f32 %v1737_v13, %v1437_v6  ;;  %v1751_v17 = vadd.f32 %v1750_v14, %v1438_v7  ;;  %v3995_v7 = vld [vmem:[%s4441_s28 + $0x398] sm:$0xff]  ;;  %v3994_v14 = vld [vmem:[%s4441_s28 + $0x390] sm:$0xff] }
 0x738   : > { %v1840_v23 = vmax.f32 %v1738_v15, 0.0  ;;  %v1841_v24 = vmax.f32 %v1751_v17, 0.0  ;;  %2770 = vmatpush.bf16.msrb.mxu3 %v3962_v10  ;;  %2783 = vmatpush.bf16.msra.mxu2 %v3970_v11  ;;  %v3985_v10 = vld [vmem:[%s4441_s28 + $0x348] sm:$0xff]  ;;  %v4002_v15 = vld [vmem:[%s4441_s28 + $0x3d0] sm:$0xff]  ;;  %v1443_v17 = vperm.slane %v4753_v62, 6 }
 0x73a   : > { %v1856_v29 = vpack.c.bf16 %v1840_v23, %v1840_v23  ;;  %v1857_v22 = vpack.c.bf16 %v1841_v24, %v1841_v24  ;;  %2746 = vmatpush.bf16.msrb.mxu0 %v3944_v19  ;;  %2759 = vmatpush.bf16.msrb.mxu1 %v3952_v20  ;;  %v1444_v19 = vperm.slane %v4753_v62, 7  ;;  %v3976_v20 = vld [vmem:[%s4441_s28 + $0x300] sm:$0xff] }
 0x73c   : > { %2771 = vmatpush.bf16.msrb.mxu3 %v3961_v25  ;;  %2784 = vmatpush.bf16.msra.mxu2 %v3969_v26  ;;  %v1763_v32 = vpop.f32.mrf.mxu3  ;;  %v1776_v33 = vpop.f32.mrf.mxu2  ;;  %v3993_v26 = vld [vmem:[%s4441_s28 + $0x388] sm:$0xff] }
 0x73d   : > { %v1764_v36 = vadd.f32 %v1763_v32, %v1439_v27  ;;  %v1777_v37 = vadd.f32 %v1776_v33, %v1440_v28  ;;  %2747 = vmatmul.bf16.vlgmr.msrb.gmra.mxu0 %v1856_v29  ;;  %2760 = vmatmul.bf16.vlgmr.msrb.gmra.mxu1 %v1857_v22  ;;  %v1739_v38 = vpop.f32.mrf.mxu0  ;;  %v1752_v39 = vpop.f32.mrf.mxu1  ;;  %v4001_v27 = vld [vmem:[%s4441_s28 + $0x3c8] sm:$0xff] }
 0x73e   : > { %2791 = vmatpush.bf16.msra.mxu0 %v3983_v21  ;;  %2804 = vmatpush.bf16.msra.mxu1 %v3991_v16  ;;  %v3984_v21 = vld [vmem:[%s4441_s28 + $0x340] sm:$0xff] }
 0x73f   : > { %v1842_v41 = vmax.f32 %v1764_v36, 0.0  ;;  %v1843_v42 = vmax.f32 %v1777_v37, 0.0 }
 0x740   : > { %2772 = vmatpush.bf16.msrb.mxu3 %v3960_v34  ;;  %2785 = vmatpush.bf16.msra.mxu2 %v3968_v35 }
 0x741   : > { %v1858_v45 = vpack.c.bf16 %v1842_v41, %v1842_v41  ;;  %v1859_v46 = vpack.c.bf16 %v1843_v42, %v1843_v42 }
 0x742   : > { %2792 = vmatpush.bf16.msra.mxu0 %v3982_v30  ;;  %2805 = vmatpush.bf16.msra.mxu1 %v3990_v31  ;;  %v3992_v30 = vld [vmem:[%s4441_s28 + $0x380] sm:$0xff] }
 0x743   : > { %2773 = vmatmul.bf16.vlgmr.msrb.gmra.mxu3 %v1858_v45  ;;  %2786 = vmatmul.bf16.vlgmr.msra.gmra.mxu2 %v1859_v46  ;;  %v4000_v31 = vld [vmem:[%s4441_s28 + $0x3c0] sm:$0xff] }
 0x744   : > { %2817 = vmatpush.bf16.msra.mxu3 %v3999_v40  ;;  %2830 = vmatpush.bf16.msrb.mxu2 %v4007_v8  ;;  %v1765_v51 = vpop.f32.mrf.mxu3  ;;  %v1778_v52 = vpop.f32.mrf.mxu2  ;;  %v4098_v45 = vld [vmem:[%s704_s15] ss:$0 sm:$0xff] }
 0x745   : > { %v1789_v53 = vpop.f32.mrf.mxu0  ;;  %v1802_v54 = vpop.f32.mrf.mxu1 }
 0x746   : > { %2793 = vmatpush.bf16.msra.mxu0 %v3981_v43  ;;  %2806 = vmatpush.bf16.msra.mxu1 %v3989_v44  ;;  %v1790_v11 = vadd.f32 %v1789_v53, %v1441_v0  ;;  %v1803_v13 = vadd.f32 %v1802_v54, %v1442_v1 }
 0x748   : > { %2818 = vmatpush.bf16.msra.mxu3 %v3998_v47  ;;  %2831 = vmatpush.bf16.msrb.mxu2 %v4006_v48  ;;  %v1844_v16 = vmax.f32 %v1790_v11, 0.0  ;;  %v1845_v23 = vmax.f32 %v1803_v13, 0.0 }
 0x74a   : > { %2794 = vmatpush.bf16.msra.mxu0 %v3980_v49  ;;  %2807 = vmatpush.bf16.msra.mxu1 %v3988_v50  ;;  %v1860_v22 = vpack.c.bf16 %v1844_v16, %v1844_v16  ;;  %v1861_v62 = vpack.c.bf16 %v1845_v23, %v1845_v23 }
 0x74c   : > { %2819 = vmatpush.bf16.msra.mxu3 %v3997_v56  ;;  %2832 = vmatpush.bf16.msrb.mxu2 %v4005_v57  ;;  %v1815_v2 = vpop.f32.mrf.mxu3  ;;  %v1828_v4 = vpop.f32.mrf.mxu2 }
 0x74d   : > { %v1791_v5 = vpop.f32.mrf.mxu0  ;;  %v1804_v6 = vpop.f32.mrf.mxu1  ;;  %v1816_v28 = vadd.f32 %v1815_v2, %v1443_v17  ;;  %v1829_v29 = vadd.f32 %v1828_v4, %v1444_v19 }
 0x74e   : > { %2795 = vmatpush.bf16.msra.mxu0 %v3979_v58  ;;  %2808 = vmatpush.bf16.msra.mxu1 %v3987_v59 }
 0x74f   : > { %v1846_v32 = vmax.f32 %v1816_v28, 0.0  ;;  %v1847_v33 = vmax.f32 %v1829_v29, 0.0 }
 0x750   : > { %2820 = vmatpush.bf16.msra.mxu3 %v3996_v60  ;;  %2833 = vmatpush.bf16.msrb.mxu2 %v4004_v61 }
 0x751   : > { %v1862_v34 = vpack.c.bf16 %v1846_v32, %v1846_v32  ;;  %v1863_v35 = vpack.c.bf16 %v1847_v33, %v1847_v33 }
 0x752   : > { %2796 = vmatpush.bf16.msra.mxu0 %v3978_v3  ;;  %2809 = vmatpush.bf16.msra.mxu1 %v3986_v63 }
 0x754   : > { %2821 = vmatpush.bf16.msra.mxu3 %v3995_v7  ;;  %2834 = vmatpush.bf16.msrb.mxu2 %v4003_v9  ;;  %v1817_v24 = vpop.f32.mrf.mxu3  ;;  %v1830_v25 = vpop.f32.mrf.mxu2 }
 0x756   : > { %2797 = vmatpush.bf16.msra.mxu0 %v3977_v55  ;;  %2810 = vmatpush.bf16.msra.mxu1 %v3985_v10 }
 0x758   : > { %2822 = vmatpush.bf16.msra.mxu3 %v3994_v14  ;;  %2835 = vmatpush.bf16.msrb.mxu2 %v4002_v15 }
 0x75a   : > { %2798 = vmatpush.bf16.msra.mxu0 %v3976_v20  ;;  %2811 = vmatpush.bf16.msra.mxu1 %v3984_v21 }
 0x75c   : > { %2823 = vmatpush.bf16.msra.mxu3 %v3993_v26  ;;  %2836 = vmatpush.bf16.msrb.mxu2 %v4001_v27 }
 0x75d   : > { %2799 = vmatmul.bf16.vlgmr.msra.gmra.mxu0 %v1860_v22  ;;  %2812 = vmatmul.bf16.vlgmr.msra.gmra.mxu1 %v1861_v62 }
 0x760   : > { %2824 = vmatpush.bf16.msra.mxu3 %v3992_v30  ;;  %2837 = vmatpush.bf16.msrb.mxu2 %v4000_v31 }
 0x763   : > { %2825 = vmatmul.bf16.vlgmr.msra.gmra.mxu3 %v1862_v34  ;;  %2838 = vmatmul.bf16.vlgmr.msrb.gmra.mxu2 %v1863_v35 }
 0x799   : > { %v2644_v36 = vpop.f32.mrf.mxu0  ;;  %v2657_v37 = vpop.f32.mrf.mxu1 }
 0x79a   : > { %v2645_v48 = vadd.f32 %v4098_v45, %v2644_v36 }
 0x79c   : > { %v2658_v51 = vadd.f32 %v2657_v37, %v2645_v48 }
 0x7a1   : > { %v2646_v38 = vpop.f32.mrf.mxu0  ;;  %v2659_v39 = vpop.f32.mrf.mxu1 }
 0x7a6   : > { %v2670_v40 = vpop.f32.mrf.mxu3  ;;  %v2683_v8 = vpop.f32.mrf.mxu2 }
 0x7a7   : > { %v2671_v54 = vadd.f32 %v2670_v40, %v2658_v51  ;;  %v4099_v40 = vld [vmem:[%s707_s25] ss:$0 sm:$0xff] }
 0x7a9   : > { %v2684_v58 = vadd.f32 %v2683_v8, %v2671_v54  ;;  %v4100_v8 = vld [vmem:[%s710_s12] ss:$0 sm:$0xff] }
 0x7aa   : > { %v2696_v41 = vpop.f32.mrf.mxu0  ;;  %v2709_v42 = vpop.f32.mrf.mxu1 }
 0x7ab   : > { %v2697_v61 = vadd.f32 %v2696_v41, %v2684_v58 }
 0x7ad   : > { %v2710_v0 = vadd.f32 %v2709_v42, %v2697_v61 }
 0x7ae   : > { %v2672_v43 = vpop.f32.mrf.mxu3  ;;  %v2685_v44 = vpop.f32.mrf.mxu2 }
 0x7b2   : > { %v2698_v46 = vpop.f32.mrf.mxu0  ;;  %v2711_v47 = vpop.f32.mrf.mxu1 }
 0x7b6   : > { %v2722_v49 = vpop.f32.mrf.mxu3  ;;  %v2735_v50 = vpop.f32.mrf.mxu2 }
 0x7b7   : > { %v2723_v1 = vadd.f32 %v2722_v49, %v2710_v0 }
 0x7b9   : > { %v2736_v2 = vadd.f32 %v2735_v50, %v2723_v1 }
 0x7ba   : > { %v2748_v52 = vpop.f32.mrf.mxu0  ;;  %v2761_v53 = vpop.f32.mrf.mxu1 }
 0x7bb   : > { %v2749_v6 = vadd.f32 %v2748_v52, %v2736_v2 }
 0x7bd   : > { %v2762_v7 = vadd.f32 %v2761_v53, %v2749_v6 }
 0x7be   : > { %v2724_v56 = vpop.f32.mrf.mxu3  ;;  %v2737_v57 = vpop.f32.mrf.mxu2 }
 0x7c2   : > { %v2750_v59 = vpop.f32.mrf.mxu0  ;;  %v2763_v60 = vpop.f32.mrf.mxu1 }
 0x7c6   : > { %v2774_v3 = vpop.f32.mrf.mxu3  ;;  %v2787_v63 = vpop.f32.mrf.mxu2 }
 0x7c7   : > { %v2775_v10 = vadd.f32 %v2774_v3, %v2762_v7 }
 0x7c9   : > { %v2788_v11 = vadd.f32 %v2787_v63, %v2775_v10 }
 0x7ce   : > { %v2776_v4 = vpop.f32.mrf.mxu3  ;;  %v2789_v5 = vpop.f32.mrf.mxu2 }
 0x7da   : > { %v2800_v9 = vpop.f32.mrf.mxu0  ;;  %v2813_v55 = vpop.f32.mrf.mxu1 }
 0x7db   : > { %v2801_v13 = vadd.f32 %v2800_v9, %v2788_v11 }
 0x7dd   : > { %v2814_v17 = vadd.f32 %v2813_v55, %v2801_v13 }
 0x7e2   : > { %v2802_v14 = vpop.f32.mrf.mxu0  ;;  %v2815_v15 = vpop.f32.mrf.mxu1 }
 0x7e6   : > { %v2826_v19 = vpop.f32.mrf.mxu3  ;;  %v2839_v20 = vpop.f32.mrf.mxu2 }
 0x7e7   : > { %v2827_v21 = vadd.f32 %v2826_v19, %v2814_v17 }
 0x7e9   : > { %v2840_v16 = vadd.f32 %v2839_v20, %v2827_v21 }
 0x7eb   : > { %v2843_v23 = vadd.f32 %v2840_v16, %v4592_v12 }
 0x7ed   : > { %v2844_v24 = vsel %vm1386_vm7, %v2843_v23, 0.0  ;;  %v2848_v27 = vmul.f32 %v2843_v23, %v2843_v23 }
 0x7ee   : > { %v2828_v25 = vpop.f32.mrf.mxu3  ;;  %v2841_v26 = vpop.f32.mrf.mxu2  ;;  %2845 = vadd.xlane.f32.xlu1 %v2844_v24 }
 0x7ef   : > { %v2849_v28 = vsel %vm1386_vm7, %v2848_v27, 0.0 }
 0x7f6   : > { %2850 = vadd.xlane.f32.xlu1 %v2849_v28 }
 0x861   : > { %v2846_v29 = vpop.xlane.xlu1 %2845 }
 0x862   : > { %v2847_v22 = vmul.f32 %v2846_v29, %v4551_v18 }
 0x864   : > { %v2853_v30 = vmul.f32 %v2847_v22, %v2847_v22  ;;  %v2855_v39 = vsub.f32 %v2843_v23, %v2847_v22 }
 0x869   : > { %v2851_v62 = vpop.xlane.xlu1 %2850 }
 0x86a   : > { %v2852_v31 = vmul.f32 %v2851_v62, %v4551_v18 }
 0x86c   : > { %v2854_v32 = vsub.f32 %v2852_v31, %v2853_v30 }
 0x86e   : > { %v2856_v12 = vadd.f32 1e-05, %v2854_v32 }
 0x870   : > { %4121 = vrsqrt.f32 %v2856_v12  ;;  %vm2863_vm13 = vweird.f32 %v2856_v12 }
 0x876   : > { %v4122_v33 = vpop.eup %4121 }
 0x877   : > { %v2858_v34 = vmul.f32 %v4122_v33, %v2856_v12  ;;  %vm2864_vm12 = vweird.f32 %v4122_v33 }
 0x878   : > { %vm2865_vm14 = vmor %vm2863_vm13, %vm2864_vm12 }
 0x879   : > { %v2859_v35 = vmul.f32 %v4122_v33, %v2858_v34 }
 0x87b   : > { %v2860_v36 = vmul.f32 0.5, %v2859_v35 }
 0x87d   : > { %v2861_v37 = vsub.f32 1.5, %v2860_v36 }
 0x87f   : > { %v2862_v38 = vmul.f32 %v4122_v33, %v2861_v37 }
 0x881   : > { %v2866_v18 = vsel %vm2865_vm14, %v4122_v33, %v2862_v38 }
 0x882   : > { %v2867_v41 = vmul.f32 %v2866_v18, %v2855_v39 }
 0x884   : > { %v2871_v42 = vmul.f32 %v4099_v40, %v2867_v41  ;;  %2880 = sbr.rel (%p3828_p1) target bundleno = 2327 (0x917), region = 88 }
 0x886   : > { %v2875_v43 = vadd.f32 %v4100_v8, %v2871_v42 }
 0x888   : > { %2876 = vst.msk [vmem:[#allocation2] sm:$0x3] %vm1386_vm7, %v2875_v43 }
 0x889   : > { %v4009_v44 = vld [vmem:[%s4961_s0 + $0x8] sm:$0xff]  ;;  %v4008_v45 = vld [vmem:[%s4961_s0] sm:$0xff]  ;;  %v2881_v46 = vpack.c.bf16 %v2875_v43, %v2875_v43  ;;  %vm2914_vm15 = vcmask 74752  }
 0x88a   : > { %2907 = vmatpush.bf16.msra.mxu0 %v4009_v44 }
 0x88e   : > { %2908 = vmatpush.bf16.msra.mxu0 %v4008_v45 }
 0x891   : > { %3837 = vmatmul.msk.bf16.vlgmr.msra.gmra.mxu0 %vm1042_vm1, %v2881_v46 }
 0x90e   : > { %v2910_v47 = vpop.f32.mrf.mxu0 }
 0x90f   : > { %2915 = vst.msk [vmem:[%s658_s2] sm:$0x3] %vm2914_vm15, %v2910_v47 }
 0x916   : > { %v2912_v48 = vpop.f32.mrf.mxu0 }
 0x917 PF: > { %s4962_s17 = sld [smem:[#allocation10_spill]]  ;;  %s2929_s28 = sshll.u32 %s658_s2, 4  ;;  %s2930_s28 = int_to_ptr.vmem [resolvable:$true] %s2929_s28 }
 0x918   : > { %s4963_s12 = sld [smem:[#allocation7_spill]] }
 0x919   : > { %s4965_s21 = sld [smem:[#allocation29_spill]] }
 0x91d   : > { %s3839_s9 = sshll.u32 %s4962_s17, 1 }
 0x91e   : > { %s4967_s15 = sand.u32 1, %s4963_s12  }
 0x91f   : > { %s4966_s4 = smov %s4965_s21  ;;  %s2927_s20 = scalar_lea.hbm %s4965_s21, %s3839_s9 }
 0x920   : > { %s2931_s30 = sshll.u32 %s2927_s20, 4  ;;  %s2917_s27 = scalar_lea.sflag [#allocation4], %s4967_s15  ;;  %s2932_s30 = int_to_ptr.hbm [resolvable:$true] %s2931_s30 }
 0x921   : > { %s4137_s29 = sshra.s32 %s2932_s30, 4  ;;  %s4143_s14 = scalar_lea.hbm %s4966_s4, 18  ;;  %s4138_s29 = int_to_ptr.hbm [resolvable:$true] %s4137_s29 }
 0x922   : > { %s4139_s16 = scalar_lea.hbm %s4138_s29, 2  ;;  %p4144_p6 = scmp.lt.s32.totalorder %s4138_s29, %s4966_s4 }
 0x923   : > { %p4140_p2 = scmp.ne.s32.totalorder %s4138_s29, %s4139_s16  ;;  %p4145_p7 = scmp.lt.s32.totalorder %s4143_s14, %s4139_s16 }
 0x925   : > { %p4141_p4 = pnand %p4140_p2, %p4360_p3  ;;  %p4146_p8 = por %p4145_p7, %p4144_p6 }
 0x927   : > { %p4142_p5 = pneg %p4141_p4 }
 0x929   : > { %p4147_p10 = pnand %p4146_p8, %p4142_p5 }
 0x92b   : > { %4150 = shalt.err (!%p4147_p10)
}
 0x92c   : > { %4010 = dma.vmem_to_hbm [thread:$0]  (%p4360_p3), %s2930_s28, 32, %s2932_s30, %s2917_s27  }
 0x92d PF: > { %s4968_s23 = sld [smem:[#allocation13_spill]] }
 0x92e   : > { %s4969_s2 = sld [smem:[#allocation6_spill]] }
 0x933   : > { %p4016_p11 = scmp.ge.s32.totalorder %s4968_s23, 2 }
 0x934   : > { %s2943_s3 = sand.u32 1, %s4969_s2  }
 0x935   : > { %p4013_p12 = pnand %p4016_p11, %p4370_p9  ;;  %s2944_s17 = scalar_lea.sflag [#allocation4], %s2943_s3 }
 0x937   : > { %p4014_p13 = pneg %p4013_p12 }
 0x939   : > { %4184 = dma.done.wait (%p4014_p13), %s2944_s17, 32  }
 0x93a   : > { %4186 = vsyncadd (%p4014_p13), %s2944_s17, 4294967264  ;;  %s28_s25 = sadd.s32 1, %s4968_s23   ;;  %s4971_s18 = sld [smem:[#allocation7_spill]] }
 0x93b   : > { %p25_p0 = scmp.ge.s32.totalorder %s28_s25, 20   ;;  %s4972_s19 = sld [smem:[#allocation8_spill]] }
 0x93c   : > { %s4973_s20 = sld [smem:[#allocation18_spill]] }
 0x93d   : > { %s4974_s21 = sld [smem:[#allocation11_spill]]  ;;  %27 = sbr.rel (!%p25_p0) target bundleno = 16 (0x10), region = 162 }
 0x93e   : > { %s4975_s22 = sld [smem:[#allocation12_spill]] }
 0x93f   : > { %s4976_s23 = sld [smem:[#allocation14_spill]] }
 0x940   : > { %s4977_s24 = sld [smem:[#allocation16_spill]] }
 0x942   :  { %2950 = vsyncpa [#allocation4], 1 }
 0x943   :  { %2952 = vsyncpa [#allocation4 + $0x1], 1 }

</bundles_post_ra>
